<compile_context>
chip_gen: v7x
topology: tpu7x:2x2x1
jax: 0.10.0
libtpu: 0.0.40
codegen_flags: <defaults>
</compile_context>

<pallas_src>
import functools

import jax
import jax.numpy as jnp
from jax.experimental import pallas as pl
from jax.experimental.pallas import tpu as pltpu

# ----------------------------- model hyper-params ---------------------------
LATENT_DIMS = 10
CAPACITY = 4          # original: 32
H_IN, W_IN = 16, 32   # original: 400, 640
HQ, WQ = H_IN // 4, W_IN // 4          # encoded spatial (original: 100, 160)
FEAT = 2 * CAPACITY * HQ * WQ          # flatten size feeding fc_mu / fc_logvar
BN_EPS = 1e-5

# tile caps (sized to fit comfortably in VMEM on v5e/v6e/v7x with double-buffering)
_TM, _TN, _TK = 512, 256, 512


# ------------------------------ Pallas kernel -------------------------------
def _fused_matmul_kernel(x_ref, w_ref, *rest, activation, has_bias):
    """acc += x @ w over K blocks; at the last K block apply
       out = act(acc [+ b]) * scale + shift   (per output column)."""
    if has_bias:
        b_ref, scale_ref, shift_ref, o_ref, acc_ref = rest
    else:
        b_ref = None
        scale_ref, shift_ref, o_ref, acc_ref = rest

    k = pl.program_id(3)
    nk = pl.num_programs(3)

    @pl.when(k == 0)
    def _():
        acc_ref[...] = jnp.zeros_like(acc_ref)

    acc_ref[...] += jnp.dot(x_ref[0], w_ref[0],
                            preferred_element_type=jnp.float32)

    @pl.when(k == nk - 1)
    def _():
        res = acc_ref[...]
        if has_bias:
            res = res + b_ref[...]
        if activation == "relu":
            res = jnp.maximum(res, 0.0)
        elif activation == "sigmoid":
            res = jax.nn.sigmoid(res)
        o_ref[0] = (res * scale_ref[...] + shift_ref[...]).astype(o_ref.dtype)


def _rup(v, m):
    return ((v + m - 1) // m) * m


def fused_matmul(x, w, b, scale, shift, activation):
    """out[g] = act(x[g] @ w[g] [+ b]) * scale + shift.

    x: (M, K) or (G, M, K); w: (K, N) or (G, K, N); b/scale/shift: (N,) shared
    across G.  Returns f32 (M, N) or (G, M, N)."""
    squeeze = x.ndim == 2
    if squeeze:
        x, w = x[None], w[None]
    g, m, kdim = x.shape
    n = w.shape[-1]

    scale = scale.reshape(1, n).astype(jnp.float32)
    shift = shift.reshape(1, n).astype(jnp.float32)
    b = None if b is None else b.reshape(1, n).astype(jnp.float32)
    if activation == "none" and b is not None:
        # fold bias into shift:  (x@w + b)*s + t == (x@w)*s + (b*s + t)
        shift = b * scale + shift
        b = None
    has_bias = b is not None

    # tile sizes & padded extents (lane-dense: N padded to multiples of 128)
    mp = _rup(m, 8)
    tm = min(_TM, mp)
    mp = _rup(mp, tm)
    kp = _rup(kdim, 128)
    tk = min(_TK, kp)
    kp = _rup(kp, tk)
    np_ = _rup(n, 128)
    tn = min(_TN, np_)
    np_ = _rup(np_, tn)

    # bf16 MXU operands, f32 accumulation / epilogue.
    x_p = jnp.pad(x.astype(jnp.bfloat16), ((0, 0), (0, mp - m), (0, kp - kdim)))
    w_p = jnp.pad(w.astype(jnp.bfloat16), ((0, 0), (0, kp - kdim), (0, np_ - n)))
    scale_p = jnp.pad(scale, ((0, 0), (0, np_ - n)))
    shift_p = jnp.pad(shift, ((0, 0), (0, np_ - n)))

    in_specs = [
        pl.BlockSpec((1, tm, tk), lambda gi, i, j, kk: (gi, i, kk)),
        pl.BlockSpec((1, tk, tn), lambda gi, i, j, kk: (gi, kk, j)),
    ]
    operands = [x_p, w_p]
    if has_bias:
        b_p = jnp.pad(b, ((0, 0), (0, np_ - n)))
        in_specs.append(pl.BlockSpec((1, tn), lambda gi, i, j, kk: (0, j)))
        operands.append(b_p)
    in_specs.append(pl.BlockSpec((1, tn), lambda gi, i, j, kk: (0, j)))
    in_specs.append(pl.BlockSpec((1, tn), lambda gi, i, j, kk: (0, j)))
    operands += [scale_p, shift_p]

    flops = 2 * g * mp * kp * np_
    transc = g * mp * np_ if activation == "sigmoid" else 0
    bytes_acc = int(x_p.size) * 2 + int(w_p.size) * 2 + g * mp * np_ * 4

    kern = functools.partial(_fused_matmul_kernel, activation=activation,
                             has_bias=has_bias)
    out = pl.pallas_call(
        kern,
        out_shape=jax.ShapeDtypeStruct((g, mp, np_), jnp.float32),
        grid=(g, mp // tm, np_ // tn, kp // tk),
        in_specs=in_specs,
        out_specs=pl.BlockSpec((1, tm, tn), lambda gi, i, j, kk: (gi, i, j)),
        scratch_shapes=[pltpu.VMEM((tm, tn), jnp.float32)],
        compiler_params=pltpu.CompilerParams(
            dimension_semantics=("parallel", "parallel", "parallel", "arbitrary")),
        cost_estimate=pl.CostEstimate(flops=flops, transcendentals=transc,
                                      bytes_accessed=bytes_acc),
    )(*operands)

    out = out[:, :m, :n]
    return out[0] if squeeze else out


# ------------------------------- JAX glue ------------------------------------
def _im2col(x, k, stride, pad):
    """x: NHWC -> (N*Ho*Wo, k*k*C) patch matrix (column order kh, kw, cin)."""
    n, h, w, c = x.shape
    xp = jnp.pad(x, ((0, 0), (pad, pad), (pad, pad), (0, 0))) if pad else x
    ho = (h + 2 * pad - k) // stride + 1
    wo = (w + 2 * pad - k) // stride + 1
    cols = []
    for i in range(k):
        for j in range(k):
            cols.append(xp[:, i:i + stride * (ho - 1) + 1:stride,
                            j:j + stride * (wo - 1) + 1:stride, :])
    patches = jnp.stack(cols, axis=3)              # (N, Ho, Wo, k*k, C)
    return patches.reshape(n * ho * wo, k * k * c), ho, wo


def conv2d_s2(x_nhwc, w_pt, b, scale, shift, act):
    """Conv2d(k=4, stride=2, pad=1) fused with bias/act/BN.  w_pt: (Cout,Cin,4,4)."""
    cout, cin, k, _ = w_pt.shape
    patches, ho, wo = _im2col(x_nhwc, k, 2, 1)
    wm = jnp.transpose(w_pt, (2, 3, 1, 0)).reshape(k * k * cin, cout)
    out = fused_matmul(patches, wm, b, scale, shift, act)
    return out.reshape(x_nhwc.shape[0], ho, wo, cout)


def conv_transpose2d_s2(x_nhwc, w_pt, b, scale, shift, act):
    """ConvTranspose2d(k=4, stride=2, pad=1) fused, via 4-phase sub-pixel
    decomposition (no zero-dilated input).  w_pt: (Cin, Cout, 4, 4)."""
    n, h, w, cin = x_nhwc.shape
    cout = w_pt.shape[1]
    xp = jnp.pad(x_nhwc, ((0, 0), (1, 1), (1, 1), (0, 0)))   # pad 1 each side
    patch_list, weight_list = [], []
    for py in (0, 1):
        ys = slice(None, None, -2) if py == 0 else slice(2, None, -2)  # ky taps
        for px in (0, 1):
            xs = slice(None, None, -2) if px == 0 else slice(2, None, -2)
            xv = xp[:, py:py + h + 1, px:px + w + 1, :]
            p, _, _ = _im2col(xv, 2, 1, 0)                 # (n*h*w, 4*cin)
            patch_list.append(p)
            wsub = w_pt[:, :, ys, xs]                      # (cin, cout, 2, 2)
            weight_list.append(
                jnp.transpose(wsub, (2, 3, 0, 1)).reshape(4 * cin, cout))
    x_stack = jnp.stack(patch_list, axis=0)                # (4, n*h*w, 4*cin)
    w_stack = jnp.stack(weight_list, axis=0)               # (4, 4*cin, cout)
    out = fused_matmul(x_stack, w_stack, b, scale, shift, act)  # (4, n*h*w, cout)
    out = out.reshape(2, 2, n, h, w, cout)                 # (py, px, n, h, w, c)
    out = jnp.transpose(out, (2, 3, 0, 4, 1, 5))           # (n, h, py, w, px, c)
    return out.reshape(n, 2 * h, 2 * w, cout)


def _bn_affine(bn):
    gamma, beta, mean, var = bn
    s = gamma / jnp.sqrt(var + BN_EPS)
    return s, beta - mean * s


def _chw_to_hwc_perm(c, h, w):
    """perm[i_hwc] = i_chw, so rows/cols in PyTorch (C,H,W)-flatten order can be
    re-indexed once to match an NHWC flatten of the activations."""
    return jnp.arange(c * h * w).reshape(c, h, w).transpose(1, 2, 0).reshape(-1)


# ------------------------------ parameters -----------------------------------
def init_params(key):
    ks = jax.random.split(key, 16)
    c, c2 = CAPACITY, 2 * CAPACITY

    def nrm(k, shape, s=0.05):
        return (s * jax.random.normal(k, shape)).astype(jnp.float32)

    def bn(k, ch):
        g = 1.0 + 0.1 * jax.random.normal(k, (ch,)).astype(jnp.float32)
        b = 0.1 * jax.random.normal(jax.random.fold_in(k, 1), (ch,)).astype(jnp.float32)
        return (g, b, jnp.zeros((ch,), jnp.float32), jnp.ones((ch,), jnp.float32))

    # FC weights generated in PyTorch (C,H,W)-flatten layout, then permuted once
    # so the forward pass can keep activations NHWC-flat (no big transposes),
    # and fc_mu / fc_logvar concatenated so they run as one fused GEMM.
    perm = _chw_to_hwc_perm(c2, HQ, WQ)
    fc_mu_w = nrm(ks[6], (FEAT, LATENT_DIMS))
    fc_mu_b = nrm(ks[7], (LATENT_DIMS,))
    fc_logvar_w = nrm(ks[8], (FEAT, LATENT_DIMS))
    fc_logvar_b = nrm(ks[9], (LATENT_DIMS,))
    fc_z_w = nrm(ks[10], (LATENT_DIMS, FEAT))
    fc_z_b = nrm(ks[11], (FEAT,))

    fc_mulog_w = jnp.concatenate([fc_mu_w, fc_logvar_w], axis=1)[perm, :]
    fc_mulog_b = jnp.concatenate([fc_mu_b, fc_logvar_b], axis=0)
    fc_z_w_hwc = fc_z_w[:, perm]
    fc_z_b_hwc = fc_z_b[perm]

    return dict(
        w1=nrm(ks[0], (c, 1, 4, 4)),       b1=nrm(ks[1], (c,)),
        bn1=bn(ks[2], c),
        w2=nrm(ks[3], (c2, c, 4, 4)),      b2=nrm(ks[4], (c2,)),
        bn2=bn(ks[5], c2),
        fc_mulog_w=fc_mulog_w,             fc_mulog_b=fc_mulog_b,
        fc_z_w=fc_z_w_hwc,                 fc_z_b=fc_z_b_hwc,
        bn3=bn(ks[12], c2),                # decoder leading BN(2C)
        wt1=nrm(ks[13], (c2, c, 4, 4)),    bt1=nrm(ks[14], (c,)),
        bn4=bn(ks[15], c),
        wt2=nrm(jax.random.fold_in(key, 99), (c, 5, 4, 4)),
        bt2=nrm(jax.random.fold_in(key, 100), (5,)),
    )


# ------------------------------ forward pass ---------------------------------
@jax.jit
def ae_forward(x_nchw, params):
    n = x_nchw.shape[0]
    c2 = 2 * CAPACITY
    x = jnp.transpose(x_nchw, (0, 2, 3, 1))                       # NHWC

    # ---- encoder: Conv -> ReLU -> BN (x2) -> Flatten (NHWC-flat) ----
    s1, t1 = _bn_affine(params["bn1"])
    h1 = conv2d_s2(x, params["w1"], params["b1"], s1, t1, "relu")
    s2, t2 = _bn_affine(params["bn2"])
    h2 = conv2d_s2(h1, params["w2"], params["b2"], s2, t2, "relu")
    feat = h2.reshape(n, FEAT)            # FC weights pre-permuted for NHWC order

    # ---- fc_mu + fc_logvar as one fused GEMM (bias folded into shift) ----
    two_l = 2 * LATENT_DIMS
    mulog = fused_matmul(feat, params["fc_mulog_w"], params["fc_mulog_b"],
                         jnp.ones((two_l,), jnp.float32),
                         jnp.zeros((two_l,), jnp.float32), "none")
    mu, logvar = mulog[:, :LATENT_DIMS], mulog[:, LATENT_DIMS:]

    # ---- decode(mu): fc_z with the decoder's leading BN folded per column ----
    s3, t3 = _bn_affine(params["bn3"])
    scale_cols = jnp.tile(s3, HQ * WQ)     # NHWC-flat columns: channel fastest
    shift_cols = jnp.tile(t3, HQ * WQ)
    z = fused_matmul(mu, params["fc_z_w"], params["fc_z_b"],
                     scale_cols, shift_cols, "none")
    zi = z.reshape(n, HQ, WQ, c2)                                 # NHWC

    # ---- decoder: ConvT -> ReLU -> BN, ConvT -> Sigmoid ----
    s4, t4 = _bn_affine(params["bn4"])
    d1 = conv_transpose2d_s2(zi, params["wt1"], params["bt1"], s4, t4, "relu")
    x_hat = conv_transpose2d_s2(d1, params["wt2"], params["bt2"],
                                jnp.ones((5,), jnp.float32),
                                jnp.zeros((5,), jnp.float32), "sigmoid")

    x_hat = jnp.transpose(x_hat, (0, 3, 1, 2))                    # back to NCHW
    return x_hat, mu, logvar


# --------------------------------- main --------------------------------------
if __name__ == "__main__":
    key = jax.random.PRNGKey(0)
    k_x, k_p = jax.random.split(key)
    x = jax.random.normal(k_x, (2, 1, H_IN, W_IN), dtype=jnp.float32)  # NCHW input
    params = init_params(k_p)

    x_hat, mu, logvar = ae_forward(x, params)
    jax.block_until_ready((x_hat, mu, logvar))

    assert x_hat.shape == (2, 5, H_IN, W_IN)
    assert mu.shape == (2, LATENT_DIMS) and logvar.shape == (2, LATENT_DIMS)
    assert bool(jnp.all(jnp.isfinite(x_hat)))
    assert bool(jnp.all((x_hat >= 0.0) & (x_hat <= 1.0)))  # sigmoid output range
    print("KERNEL_OK")
</pallas_src>

<mosaic_0001>
module attributes {stable_mosaic.version = 11 : i64} {
  func.func @_fused_matmul_kernel(%arg0: i32, %arg1: i32, %arg2: i32, %arg3: i32, %arg4: memref<1x256x128xbf16, #tpu.memory_space<vmem>>, %arg5: memref<1x128x128xbf16, #tpu.memory_space<vmem>>, %arg6: memref<1x128xf32, #tpu.memory_space<vmem>>, %arg7: memref<1x128xf32, #tpu.memory_space<vmem>>, %arg8: memref<1x128xf32, #tpu.memory_space<vmem>>, %arg9: memref<1x256x128xf32, #tpu.memory_space<vmem>>, %arg10: memref<256x128xf32, #tpu.memory_space<vmem>>) attributes {dimension_semantics = [#tpu.dimension_semantics<parallel>, #tpu.dimension_semantics<parallel>, #tpu.dimension_semantics<parallel>, #tpu.dimension_semantics<arbitrary>], iteration_bounds = array<i64: 1, 1, 1, 1>, scalar_prefetch = 0 : i64, scratch_operands = 1 : i64, tpu.core_type = #tpu.core_type<tc>, window_params = [{transform_indices = @transform_0, window_bounds = array<i64: 1, 256, 128>}, {transform_indices = @transform_1, window_bounds = array<i64: 1, 128, 128>}, {transform_indices = @transform_2, window_bounds = array<i64: 1, 128>}, {transform_indices = @transform_3, window_bounds = array<i64: 1, 128>}, {transform_indices = @transform_4, window_bounds = array<i64: 1, 128>}, {transform_indices = @transform_5, window_bounds = array<i64: 1, 256, 128>}]} {
    %c0_i32 = arith.constant 0 : i32
    %0 = arith.cmpi eq, %arg3, %c0_i32 : i32
    %1 = arith.extui %0 : i1 to i32
    %c0_i32_0 = arith.constant 0 : i32
    %2 = arith.cmpi ne, %1, %c0_i32_0 : i32
    scf.if %2 {
      %cst_12 = arith.constant 0.000000e+00 : f32
      %14 = vector.broadcast %cst_12 : f32 to vector<256x128xf32>
      %c0_13 = arith.constant 0 : index
      %c0_14 = arith.constant 0 : index
      %15 = vector.load %arg10[%c0_13, %c0_14] : memref<256x128xf32, #tpu.memory_space<vmem>>, vector<256x128xf32>
      tpu.vector_store %arg10[%c0_13, %c0_14], %14 {strides = array<i32>} : memref<256x128xf32, #tpu.memory_space<vmem>>, vector<256x128xf32>,
    } else {
    }
    %c0 = arith.constant 0 : index
    %c0_1 = arith.constant 0 : index
    %3 = vector.load %arg10[%c0, %c0_1] : memref<256x128xf32, #tpu.memory_space<vmem>>, vector<256x128xf32>
    %c0_2 = arith.constant 0 : index
    %c0_3 = arith.constant 0 : index
    %c0_4 = arith.constant 0 : index
    %4 = vector.load %arg4[%c0_2, %c0_3, %c0_4] : memref<1x256x128xbf16, #tpu.memory_space<vmem>>, vector<1x256x128xbf16>
    %5 = vector.shape_cast %4 : vector<1x256x128xbf16> to vector<256x128xbf16>
    %c0_5 = arith.constant 0 : index
    %c0_6 = arith.constant 0 : index
    %c0_7 = arith.constant 0 : index
    %6 = vector.load %arg5[%c0_5, %c0_6, %c0_7] : memref<1x128x128xbf16, #tpu.memory_space<vmem>>, vector<1x128x128xbf16>
    %7 = vector.shape_cast %6 : vector<1x128x128xbf16> to vector<128x128xbf16>
    %cst = arith.constant dense<0.000000e+00> : vector<256x128xf32>
    %8 = tpu.matmul %5, %7, %cst {dimension_numbers = #tpu.dot_dimension_numbers<[1], [0], [0], [1], [0, 0, 1, 1], [], []>} : vector<256x128xbf16>, vector<128x128xbf16>, vector<256x128xf32> -> vector<256x128xf32>
    %9 = arith.addf %3, %8 : vector<256x128xf32>
    %c0_8 = arith.constant 0 : index
    %c0_9 = arith.constant 0 : index
    %10 = vector.load %arg10[%c0_8, %c0_9] : memref<256x128xf32, #tpu.memory_space<vmem>>, vector<256x128xf32>
    tpu.vector_store %arg10[%c0_8, %c0_9], %9 {strides = array<i32>} : memref<256x128xf32, #tpu.memory_space<vmem>>, vector<256x128xf32>,
    %c0_i32_10 = arith.constant 0 : i32
    %11 = arith.cmpi eq, %arg3, %c0_i32_10 : i32
    %12 = arith.extui %11 : i1 to i32
    %c0_i32_11 = arith.constant 0 : i32
    %13 = arith.cmpi ne, %12, %c0_i32_11 : i32
    scf.if %13 {
      %c0_12 = arith.constant 0 : index
      %c0_13 = arith.constant 0 : index
      %14 = vector.load %arg10[%c0_12, %c0_13] : memref<256x128xf32, #tpu.memory_space<vmem>>, vector<256x128xf32>
      %c0_14 = arith.constant 0 : index
      %c0_15 = arith.constant 0 : index
      %15 = vector.load %arg6[%c0_14, %c0_15] : memref<1x128xf32, #tpu.memory_space<vmem>>, vector<1x128xf32>
      %16 = vector.broadcast %15 : vector<1x128xf32> to vector<256x128xf32>
      %17 = arith.addf %14, %16 : vector<256x128xf32>
      %cst_16 = arith.constant 0.000000e+00 : f32
      %18 = vector.broadcast %cst_16 : f32 to vector<256x128xf32>
      %19 = arith.maximumf %17, %18 : vector<256x128xf32>
      %c0_17 = arith.constant 0 : index
      %c0_18 = arith.constant 0 : index
      %20 = vector.load %arg7[%c0_17, %c0_18] : memref<1x128xf32, #tpu.memory_space<vmem>>, vector<1x128xf32>
      %21 = vector.broadcast %20 : vector<1x128xf32> to vector<256x128xf32>
      %22 = arith.mulf %19, %21 : vector<256x128xf32>
      %c0_19 = arith.constant 0 : index
      %c0_20 = arith.constant 0 : index
      %23 = vector.load %arg8[%c0_19, %c0_20] : memref<1x128xf32, #tpu.memory_space<vmem>>, vector<1x128xf32>
      %24 = vector.broadcast %23 : vector<1x128xf32> to vector<256x128xf32>
      %25 = arith.addf %22, %24 : vector<256x128xf32>
      %c0_21 = arith.constant 0 : index
      %c0_22 = arith.constant 0 : index
      %c0_23 = arith.constant 0 : index
      %26 = vector.load %arg9[%c0_21, %c0_22, %c0_23] : memref<1x256x128xf32, #tpu.memory_space<vmem>>, vector<1x256x128xf32>
      %27 = vector.shape_cast %26 : vector<1x256x128xf32> to vector<256x128xf32>
      %28 = vector.shape_cast %25 : vector<256x128xf32> to vector<1x256x128xf32>
      tpu.vector_store %arg9[%c0_21, %c0_22, %c0_23], %28 {strides = array<i32>} : memref<1x256x128xf32, #tpu.memory_space<vmem>>, vector<1x256x128xf32>,
    } else {
    }
    return
  }
  func.func @transform_0(%arg0: i32, %arg1: i32, %arg2: i32, %arg3: i32) -> (i32, i32, i32) {
    %c0_i32 = arith.constant 0 : i32
    return %arg0, %arg1, %arg3 : i32, i32, i32
  }
  func.func @transform_1(%arg0: i32, %arg1: i32, %arg2: i32, %arg3: i32) -> (i32, i32, i32) {
    %c0_i32 = arith.constant 0 : i32
    return %arg0, %arg3, %arg2 : i32, i32, i32
  }
  func.func @transform_2(%arg0: i32, %arg1: i32, %arg2: i32, %arg3: i32) -> (i32, i32) {
    %c0_i32 = arith.constant 0 : i32
    %c0_i32_0 = arith.constant 0 : i32
    return %c0_i32, %arg2 : i32, i32
  }
  func.func @transform_3(%arg0: i32, %arg1: i32, %arg2: i32, %arg3: i32) -> (i32, i32) {
    %c0_i32 = arith.constant 0 : i32
    %c0_i32_0 = arith.constant 0 : i32
    return %c0_i32, %arg2 : i32, i32
  }
  func.func @transform_4(%arg0: i32, %arg1: i32, %arg2: i32, %arg3: i32) -> (i32, i32) {
    %c0_i32 = arith.constant 0 : i32
    %c0_i32_0 = arith.constant 0 : i32
    return %c0_i32, %arg2 : i32, i32
  }
  func.func @transform_5(%arg0: i32, %arg1: i32, %arg2: i32, %arg3: i32) -> (i32, i32, i32) {
    %c0_i32 = arith.constant 0 : i32
    return %arg0, %arg1, %arg2 : i32, i32, i32
  }
}

module attributes {stable_mosaic.version = 11 : i64} {
  func.func @_fused_matmul_kernel(%arg0: i32, %arg1: i32, %arg2: i32, %arg3: i32, %arg4: memref<1x64x128xbf16, #tpu.memory_space<vmem>>, %arg5: memref<1x128x128xbf16, #tpu.memory_space<vmem>>, %arg6: memref<1x128xf32, #tpu.memory_space<vmem>>, %arg7: memref<1x128xf32, #tpu.memory_space<vmem>>, %arg8: memref<1x128xf32, #tpu.memory_space<vmem>>, %arg9: memref<1x64x128xf32, #tpu.memory_space<vmem>>, %arg10: memref<64x128xf32, #tpu.memory_space<vmem>>) attributes {dimension_semantics = [#tpu.dimension_semantics<parallel>, #tpu.dimension_semantics<parallel>, #tpu.dimension_semantics<parallel>, #tpu.dimension_semantics<arbitrary>], iteration_bounds = array<i64: 1, 1, 1, 1>, scalar_prefetch = 0 : i64, scratch_operands = 1 : i64, tpu.core_type = #tpu.core_type<tc>, window_params = [{transform_indices = @transform_0, window_bounds = array<i64: 1, 64, 128>}, {transform_indices = @transform_1, window_bounds = array<i64: 1, 128, 128>}, {transform_indices = @transform_2, window_bounds = array<i64: 1, 128>}, {transform_indices = @transform_3, window_bounds = array<i64: 1, 128>}, {transform_indices = @transform_4, window_bounds = array<i64: 1, 128>}, {transform_indices = @transform_5, window_bounds = array<i64: 1, 64, 128>}]} {
    %c0_i32 = arith.constant 0 : i32
    %0 = arith.cmpi eq, %arg3, %c0_i32 : i32
    %1 = arith.extui %0 : i1 to i32
    %c0_i32_0 = arith.constant 0 : i32
    %2 = arith.cmpi ne, %1, %c0_i32_0 : i32
    scf.if %2 {
      %cst_12 = arith.constant 0.000000e+00 : f32
      %14 = vector.broadcast %cst_12 : f32 to vector<64x128xf32>
      %c0_13 = arith.constant 0 : index
      %c0_14 = arith.constant 0 : index
      %15 = vector.load %arg10[%c0_13, %c0_14] : memref<64x128xf32, #tpu.memory_space<vmem>>, vector<64x128xf32>
      tpu.vector_store %arg10[%c0_13, %c0_14], %14 {strides = array<i32>} : memref<64x128xf32, #tpu.memory_space<vmem>>, vector<64x128xf32>,
    } else {
    }
    %c0 = arith.constant 0 : index
    %c0_1 = arith.constant 0 : index
    %3 = vector.load %arg10[%c0, %c0_1] : memref<64x128xf32, #tpu.memory_space<vmem>>, vector<64x128xf32>
    %c0_2 = arith.constant 0 : index
    %c0_3 = arith.constant 0 : index
    %c0_4 = arith.constant 0 : index
    %4 = vector.load %arg4[%c0_2, %c0_3, %c0_4] : memref<1x64x128xbf16, #tpu.memory_space<vmem>>, vector<1x64x128xbf16>
    %5 = vector.shape_cast %4 : vector<1x64x128xbf16> to vector<64x128xbf16>
    %c0_5 = arith.constant 0 : index
    %c0_6 = arith.constant 0 : index
    %c0_7 = arith.constant 0 : index
    %6 = vector.load %arg5[%c0_5, %c0_6, %c0_7] : memref<1x128x128xbf16, #tpu.memory_space<vmem>>, vector<1x128x128xbf16>
    %7 = vector.shape_cast %6 : vector<1x128x128xbf16> to vector<128x128xbf16>
    %cst = arith.constant dense<0.000000e+00> : vector<64x128xf32>
    %8 = tpu.matmul %5, %7, %cst {dimension_numbers = #tpu.dot_dimension_numbers<[1], [0], [0], [1], [0, 0, 1, 1], [], []>} : vector<64x128xbf16>, vector<128x128xbf16>, vector<64x128xf32> -> vector<64x128xf32>
    %9 = arith.addf %3, %8 : vector<64x128xf32>
    %c0_8 = arith.constant 0 : index
    %c0_9 = arith.constant 0 : index
    %10 = vector.load %arg10[%c0_8, %c0_9] : memref<64x128xf32, #tpu.memory_space<vmem>>, vector<64x128xf32>
    tpu.vector_store %arg10[%c0_8, %c0_9], %9 {strides = array<i32>} : memref<64x128xf32, #tpu.memory_space<vmem>>, vector<64x128xf32>,
    %c0_i32_10 = arith.constant 0 : i32
    %11 = arith.cmpi eq, %arg3, %c0_i32_10 : i32
    %12 = arith.extui %11 : i1 to i32
    %c0_i32_11 = arith.constant 0 : i32
    %13 = arith.cmpi ne, %12, %c0_i32_11 : i32
    scf.if %13 {
      %c0_12 = arith.constant 0 : index
      %c0_13 = arith.constant 0 : index
      %14 = vector.load %arg10[%c0_12, %c0_13] : memref<64x128xf32, #tpu.memory_space<vmem>>, vector<64x128xf32>
      %c0_14 = arith.constant 0 : index
      %c0_15 = arith.constant 0 : index
      %15 = vector.load %arg6[%c0_14, %c0_15] : memref<1x128xf32, #tpu.memory_space<vmem>>, vector<1x128xf32>
      %16 = vector.broadcast %15 : vector<1x128xf32> to vector<64x128xf32>
      %17 = arith.addf %14, %16 : vector<64x128xf32>
      %cst_16 = arith.constant 0.000000e+00 : f32
      %18 = vector.broadcast %cst_16 : f32 to vector<64x128xf32>
      %19 = arith.maximumf %17, %18 : vector<64x128xf32>
      %c0_17 = arith.constant 0 : index
      %c0_18 = arith.constant 0 : index
      %20 = vector.load %arg7[%c0_17, %c0_18] : memref<1x128xf32, #tpu.memory_space<vmem>>, vector<1x128xf32>
      %21 = vector.broadcast %20 : vector<1x128xf32> to vector<64x128xf32>
      %22 = arith.mulf %19, %21 : vector<64x128xf32>
      %c0_19 = arith.constant 0 : index
      %c0_20 = arith.constant 0 : index
      %23 = vector.load %arg8[%c0_19, %c0_20] : memref<1x128xf32, #tpu.memory_space<vmem>>, vector<1x128xf32>
      %24 = vector.broadcast %23 : vector<1x128xf32> to vector<64x128xf32>
      %25 = arith.addf %22, %24 : vector<64x128xf32>
      %c0_21 = arith.constant 0 : index
      %c0_22 = arith.constant 0 : index
      %c0_23 = arith.constant 0 : index
      %26 = vector.load %arg9[%c0_21, %c0_22, %c0_23] : memref<1x64x128xf32, #tpu.memory_space<vmem>>, vector<1x64x128xf32>
      %27 = vector.shape_cast %26 : vector<1x64x128xf32> to vector<64x128xf32>
      %28 = vector.shape_cast %25 : vector<64x128xf32> to vector<1x64x128xf32>
      tpu.vector_store %arg9[%c0_21, %c0_22, %c0_23], %28 {strides = array<i32>} : memref<1x64x128xf32, #tpu.memory_space<vmem>>, vector<1x64x128xf32>,
    } else {
    }
    return
  }
  func.func @transform_0(%arg0: i32, %arg1: i32, %arg2: i32, %arg3: i32) -> (i32, i32, i32) {
    %c0_i32 = arith.constant 0 : i32
    return %arg0, %arg1, %arg3 : i32, i32, i32
  }
  func.func @transform_1(%arg0: i32, %arg1: i32, %arg2: i32, %arg3: i32) -> (i32, i32, i32) {
    %c0_i32 = arith.constant 0 : i32
    return %arg0, %arg3, %arg2 : i32, i32, i32
  }
  func.func @transform_2(%arg0: i32, %arg1: i32, %arg2: i32, %arg3: i32) -> (i32, i32) {
    %c0_i32 = arith.constant 0 : i32
    %c0_i32_0 = arith.constant 0 : i32
    return %c0_i32, %arg2 : i32, i32
  }
  func.func @transform_3(%arg0: i32, %arg1: i32, %arg2: i32, %arg3: i32) -> (i32, i32) {
    %c0_i32 = arith.constant 0 : i32
    %c0_i32_0 = arith.constant 0 : i32
    return %c0_i32, %arg2 : i32, i32
  }
  func.func @transform_4(%arg0: i32, %arg1: i32, %arg2: i32, %arg3: i32) -> (i32, i32) {
    %c0_i32 = arith.constant 0 : i32
    %c0_i32_0 = arith.constant 0 : i32
    return %c0_i32, %arg2 : i32, i32
  }
  func.func @transform_5(%arg0: i32, %arg1: i32, %arg2: i32, %arg3: i32) -> (i32, i32, i32) {
    %c0_i32 = arith.constant 0 : i32
    return %arg0, %arg1, %arg2 : i32, i32, i32
  }
}

module attributes {stable_mosaic.version = 11 : i64} {
  func.func @_fused_matmul_kernel(%arg0: i32, %arg1: i32, %arg2: i32, %arg3: i32, %arg4: memref<1x8x256xbf16, #tpu.memory_space<vmem>>, %arg5: memref<1x256x128xbf16, #tpu.memory_space<vmem>>, %arg6: memref<1x128xf32, #tpu.memory_space<vmem>>, %arg7: memref<1x128xf32, #tpu.memory_space<vmem>>, %arg8: memref<1x8x128xf32, #tpu.memory_space<vmem>>, %arg9: memref<8x128xf32, #tpu.memory_space<vmem>>) attributes {dimension_semantics = [#tpu.dimension_semantics<parallel>, #tpu.dimension_semantics<parallel>, #tpu.dimension_semantics<parallel>, #tpu.dimension_semantics<arbitrary>], iteration_bounds = array<i64: 1, 1, 1, 1>, scalar_prefetch = 0 : i64, scratch_operands = 1 : i64, tpu.core_type = #tpu.core_type<tc>, window_params = [{transform_indices = @transform_0, window_bounds = array<i64: 1, 8, 256>}, {transform_indices = @transform_1, window_bounds = array<i64: 1, 256, 128>}, {transform_indices = @transform_2, window_bounds = array<i64: 1, 128>}, {transform_indices = @transform_3, window_bounds = array<i64: 1, 128>}, {transform_indices = @transform_4, window_bounds = array<i64: 1, 8, 128>}]} {
    %c0_i32 = arith.constant 0 : i32
    %0 = arith.cmpi eq, %arg3, %c0_i32 : i32
    %1 = arith.extui %0 : i1 to i32
    %c0_i32_0 = arith.constant 0 : i32
    %2 = arith.cmpi ne, %1, %c0_i32_0 : i32
    scf.if %2 {
      %cst_12 = arith.constant 0.000000e+00 : f32
      %14 = vector.broadcast %cst_12 : f32 to vector<8x128xf32>
      %c0_13 = arith.constant 0 : index
      %c0_14 = arith.constant 0 : index
      %15 = vector.load %arg9[%c0_13, %c0_14] : memref<8x128xf32, #tpu.memory_space<vmem>>, vector<8x128xf32>
      tpu.vector_store %arg9[%c0_13, %c0_14], %14 {strides = array<i32>} : memref<8x128xf32, #tpu.memory_space<vmem>>, vector<8x128xf32>,
    } else {
    }
    %c0 = arith.constant 0 : index
    %c0_1 = arith.constant 0 : index
    %3 = vector.load %arg9[%c0, %c0_1] : memref<8x128xf32, #tpu.memory_space<vmem>>, vector<8x128xf32>
    %c0_2 = arith.constant 0 : index
    %c0_3 = arith.constant 0 : index
    %c0_4 = arith.constant 0 : index
    %4 = vector.load %arg4[%c0_2, %c0_3, %c0_4] : memref<1x8x256xbf16, #tpu.memory_space<vmem>>, vector<1x8x256xbf16>
    %5 = vector.shape_cast %4 : vector<1x8x256xbf16> to vector<8x256xbf16>
    %c0_5 = arith.constant 0 : index
    %c0_6 = arith.constant 0 : index
    %c0_7 = arith.constant 0 : index
    %6 = vector.load %arg5[%c0_5, %c0_6, %c0_7] : memref<1x256x128xbf16, #tpu.memory_space<vmem>>, vector<1x256x128xbf16>
    %7 = vector.shape_cast %6 : vector<1x256x128xbf16> to vector<256x128xbf16>
    %cst = arith.constant dense<0.000000e+00> : vector<8x128xf32>
    %8 = tpu.matmul %5, %7, %cst {dimension_numbers = #tpu.dot_dimension_numbers<[1], [0], [0], [1], [0, 0, 1, 1], [], []>} : vector<8x256xbf16>, vector<256x128xbf16>, vector<8x128xf32> -> vector<8x128xf32>
    %9 = arith.addf %3, %8 : vector<8x128xf32>
    %c0_8 = arith.constant 0 : index
    %c0_9 = arith.constant 0 : index
    %10 = vector.load %arg9[%c0_8, %c0_9] : memref<8x128xf32, #tpu.memory_space<vmem>>, vector<8x128xf32>
    tpu.vector_store %arg9[%c0_8, %c0_9], %9 {strides = array<i32>} : memref<8x128xf32, #tpu.memory_space<vmem>>, vector<8x128xf32>,
    %c0_i32_10 = arith.constant 0 : i32
    %11 = arith.cmpi eq, %arg3, %c0_i32_10 : i32
    %12 = arith.extui %11 : i1 to i32
    %c0_i32_11 = arith.constant 0 : i32
    %13 = arith.cmpi ne, %12, %c0_i32_11 : i32
    scf.if %13 {
      %c0_12 = arith.constant 0 : index
      %c0_13 = arith.constant 0 : index
      %14 = vector.load %arg9[%c0_12, %c0_13] : memref<8x128xf32, #tpu.memory_space<vmem>>, vector<8x128xf32>
      %c0_14 = arith.constant 0 : index
      %c0_15 = arith.constant 0 : index
      %15 = vector.load %arg6[%c0_14, %c0_15] : memref<1x128xf32, #tpu.memory_space<vmem>>, vector<1x128xf32>
      %16 = vector.broadcast %15 : vector<1x128xf32> to vector<8x128xf32>
      %17 = arith.mulf %14, %16 : vector<8x128xf32>
      %c0_16 = arith.constant 0 : index
      %c0_17 = arith.constant 0 : index
      %18 = vector.load %arg7[%c0_16, %c0_17] : memref<1x128xf32, #tpu.memory_space<vmem>>, vector<1x128xf32>
      %19 = vector.broadcast %18 : vector<1x128xf32> to vector<8x128xf32>
      %20 = arith.addf %17, %19 : vector<8x128xf32>
      %c0_18 = arith.constant 0 : index
      %c0_19 = arith.constant 0 : index
      %c0_20 = arith.constant 0 : index
      %21 = vector.load %arg8[%c0_18, %c0_19, %c0_20] : memref<1x8x128xf32, #tpu.memory_space<vmem>>, vector<1x8x128xf32>
      %22 = vector.shape_cast %21 : vector<1x8x128xf32> to vector<8x128xf32>
      %23 = vector.shape_cast %20 : vector<8x128xf32> to vector<1x8x128xf32>
      tpu.vector_store %arg8[%c0_18, %c0_19, %c0_20], %23 {strides = array<i32>} : memref<1x8x128xf32, #tpu.memory_space<vmem>>, vector<1x8x128xf32>,
    } else {
    }
    return
  }
  func.func @transform_0(%arg0: i32, %arg1: i32, %arg2: i32, %arg3: i32) -> (i32, i32, i32) {
    %c0_i32 = arith.constant 0 : i32
    return %arg0, %arg1, %arg3 : i32, i32, i32
  }
  func.func @transform_1(%arg0: i32, %arg1: i32, %arg2: i32, %arg3: i32) -> (i32, i32, i32) {
    %c0_i32 = arith.constant 0 : i32
    return %arg0, %arg3, %arg2 : i32, i32, i32
  }
  func.func @transform_2(%arg0: i32, %arg1: i32, %arg2: i32, %arg3: i32) -> (i32, i32) {
    %c0_i32 = arith.constant 0 : i32
    %c0_i32_0 = arith.constant 0 : i32
    return %c0_i32, %arg2 : i32, i32
  }
  func.func @transform_3(%arg0: i32, %arg1: i32, %arg2: i32, %arg3: i32) -> (i32, i32) {
    %c0_i32 = arith.constant 0 : i32
    %c0_i32_0 = arith.constant 0 : i32
    return %c0_i32, %arg2 : i32, i32
  }
  func.func @transform_4(%arg0: i32, %arg1: i32, %arg2: i32, %arg3: i32) -> (i32, i32, i32) {
    %c0_i32 = arith.constant 0 : i32
    return %arg0, %arg1, %arg2 : i32, i32, i32
  }
}

module attributes {stable_mosaic.version = 11 : i64} {
  func.func @_fused_matmul_kernel(%arg0: i32, %arg1: i32, %arg2: i32, %arg3: i32, %arg4: memref<1x8x128xbf16, #tpu.memory_space<vmem>>, %arg5: memref<1x128x256xbf16, #tpu.memory_space<vmem>>, %arg6: memref<1x256xf32, #tpu.memory_space<vmem>>, %arg7: memref<1x256xf32, #tpu.memory_space<vmem>>, %arg8: memref<1x8x256xf32, #tpu.memory_space<vmem>>, %arg9: memref<8x256xf32, #tpu.memory_space<vmem>>) attributes {dimension_semantics = [#tpu.dimension_semantics<parallel>, #tpu.dimension_semantics<parallel>, #tpu.dimension_semantics<parallel>, #tpu.dimension_semantics<arbitrary>], iteration_bounds = array<i64: 1, 1, 1, 1>, scalar_prefetch = 0 : i64, scratch_operands = 1 : i64, tpu.core_type = #tpu.core_type<tc>, window_params = [{transform_indices = @transform_0, window_bounds = array<i64: 1, 8, 128>}, {transform_indices = @transform_1, window_bounds = array<i64: 1, 128, 256>}, {transform_indices = @transform_2, window_bounds = array<i64: 1, 256>}, {transform_indices = @transform_3, window_bounds = array<i64: 1, 256>}, {transform_indices = @transform_4, window_bounds = array<i64: 1, 8, 256>}]} {
    %c0_i32 = arith.constant 0 : i32
    %0 = arith.cmpi eq, %arg3, %c0_i32 : i32
    %1 = arith.extui %0 : i1 to i32
    %c0_i32_0 = arith.constant 0 : i32
    %2 = arith.cmpi ne, %1, %c0_i32_0 : i32
    scf.if %2 {
      %cst_12 = arith.constant 0.000000e+00 : f32
      %14 = vector.broadcast %cst_12 : f32 to vector<8x256xf32>
      %c0_13 = arith.constant 0 : index
      %c0_14 = arith.constant 0 : index
      %15 = vector.load %arg9[%c0_13, %c0_14] : memref<8x256xf32, #tpu.memory_space<vmem>>, vector<8x256xf32>
      tpu.vector_store %arg9[%c0_13, %c0_14], %14 {strides = array<i32>} : memref<8x256xf32, #tpu.memory_space<vmem>>, vector<8x256xf32>,
    } else {
    }
    %c0 = arith.constant 0 : index
    %c0_1 = arith.constant 0 : index
    %3 = vector.load %arg9[%c0, %c0_1] : memref<8x256xf32, #tpu.memory_space<vmem>>, vector<8x256xf32>
    %c0_2 = arith.constant 0 : index
    %c0_3 = arith.constant 0 : index
    %c0_4 = arith.constant 0 : index
    %4 = vector.load %arg4[%c0_2, %c0_3, %c0_4] : memref<1x8x128xbf16, #tpu.memory_space<vmem>>, vector<1x8x128xbf16>
    %5 = vector.shape_cast %4 : vector<1x8x128xbf16> to vector<8x128xbf16>
    %c0_5 = arith.constant 0 : index
    %c0_6 = arith.constant 0 : index
    %c0_7 = arith.constant 0 : index
    %6 = vector.load %arg5[%c0_5, %c0_6, %c0_7] : memref<1x128x256xbf16, #tpu.memory_space<vmem>>, vector<1x128x256xbf16>
    %7 = vector.shape_cast %6 : vector<1x128x256xbf16> to vector<128x256xbf16>
    %cst = arith.constant dense<0.000000e+00> : vector<8x256xf32>
    %8 = tpu.matmul %5, %7, %cst {dimension_numbers = #tpu.dot_dimension_numbers<[1], [0], [0], [1], [0, 0, 1, 1], [], []>} : vector<8x128xbf16>, vector<128x256xbf16>, vector<8x256xf32> -> vector<8x256xf32>
    %9 = arith.addf %3, %8 : vector<8x256xf32>
    %c0_8 = arith.constant 0 : index
    %c0_9 = arith.constant 0 : index
    %10 = vector.load %arg9[%c0_8, %c0_9] : memref<8x256xf32, #tpu.memory_space<vmem>>, vector<8x256xf32>
    tpu.vector_store %arg9[%c0_8, %c0_9], %9 {strides = array<i32>} : memref<8x256xf32, #tpu.memory_space<vmem>>, vector<8x256xf32>,
    %c0_i32_10 = arith.constant 0 : i32
    %11 = arith.cmpi eq, %arg3, %c0_i32_10 : i32
    %12 = arith.extui %11 : i1 to i32
    %c0_i32_11 = arith.constant 0 : i32
    %13 = arith.cmpi ne, %12, %c0_i32_11 : i32
    scf.if %13 {
      %c0_12 = arith.constant 0 : index
      %c0_13 = arith.constant 0 : index
      %14 = vector.load %arg9[%c0_12, %c0_13] : memref<8x256xf32, #tpu.memory_space<vmem>>, vector<8x256xf32>
      %c0_14 = arith.constant 0 : index
      %c0_15 = arith.constant 0 : index
      %15 = vector.load %arg6[%c0_14, %c0_15] : memref<1x256xf32, #tpu.memory_space<vmem>>, vector<1x256xf32>
      %16 = vector.broadcast %15 : vector<1x256xf32> to vector<8x256xf32>
      %17 = arith.mulf %14, %16 : vector<8x256xf32>
      %c0_16 = arith.constant 0 : index
      %c0_17 = arith.constant 0 : index
      %18 = vector.load %arg7[%c0_16, %c0_17] : memref<1x256xf32, #tpu.memory_space<vmem>>, vector<1x256xf32>
      %19 = vector.broadcast %18 : vector<1x256xf32> to vector<8x256xf32>
      %20 = arith.addf %17, %19 : vector<8x256xf32>
      %c0_18 = arith.constant 0 : index
      %c0_19 = arith.constant 0 : index
      %c0_20 = arith.constant 0 : index
      %21 = vector.load %arg8[%c0_18, %c0_19, %c0_20] : memref<1x8x256xf32, #tpu.memory_space<vmem>>, vector<1x8x256xf32>
      %22 = vector.shape_cast %21 : vector<1x8x256xf32> to vector<8x256xf32>
      %23 = vector.shape_cast %20 : vector<8x256xf32> to vector<1x8x256xf32>
      tpu.vector_store %arg8[%c0_18, %c0_19, %c0_20], %23 {strides = array<i32>} : memref<1x8x256xf32, #tpu.memory_space<vmem>>, vector<1x8x256xf32>,
    } else {
    }
    return
  }
  func.func @transform_0(%arg0: i32, %arg1: i32, %arg2: i32, %arg3: i32) -> (i32, i32, i32) {
    %c0_i32 = arith.constant 0 : i32
    return %arg0, %arg1, %arg3 : i32, i32, i32
  }
  func.func @transform_1(%arg0: i32, %arg1: i32, %arg2: i32, %arg3: i32) -> (i32, i32, i32) {
    %c0_i32 = arith.constant 0 : i32
    return %arg0, %arg3, %arg2 : i32, i32, i32
  }
  func.func @transform_2(%arg0: i32, %arg1: i32, %arg2: i32, %arg3: i32) -> (i32, i32) {
    %c0_i32 = arith.constant 0 : i32
    %c0_i32_0 = arith.constant 0 : i32
    return %c0_i32, %arg2 : i32, i32
  }
  func.func @transform_3(%arg0: i32, %arg1: i32, %arg2: i32, %arg3: i32) -> (i32, i32) {
    %c0_i32 = arith.constant 0 : i32
    %c0_i32_0 = arith.constant 0 : i32
    return %c0_i32, %arg2 : i32, i32
  }
  func.func @transform_4(%arg0: i32, %arg1: i32, %arg2: i32, %arg3: i32) -> (i32, i32, i32) {
    %c0_i32 = arith.constant 0 : i32
    return %arg0, %arg1, %arg2 : i32, i32, i32
  }
}

module attributes {stable_mosaic.version = 11 : i64} {
  func.func @_fused_matmul_kernel(%arg0: i32, %arg1: i32, %arg2: i32, %arg3: i32, %arg4: memref<1x64x128xbf16, #tpu.memory_space<vmem>>, %arg5: memref<1x128x128xbf16, #tpu.memory_space<vmem>>, %arg6: memref<1x128xf32, #tpu.memory_space<vmem>>, %arg7: memref<1x128xf32, #tpu.memory_space<vmem>>, %arg8: memref<1x128xf32, #tpu.memory_space<vmem>>, %arg9: memref<1x64x128xf32, #tpu.memory_space<vmem>>, %arg10: memref<64x128xf32, #tpu.memory_space<vmem>>) attributes {dimension_semantics = [#tpu.dimension_semantics<parallel>, #tpu.dimension_semantics<parallel>, #tpu.dimension_semantics<parallel>, #tpu.dimension_semantics<arbitrary>], iteration_bounds = array<i64: 4, 1, 1, 1>, scalar_prefetch = 0 : i64, scratch_operands = 1 : i64, tpu.core_type = #tpu.core_type<tc>, window_params = [{transform_indices = @transform_0, window_bounds = array<i64: 1, 64, 128>}, {transform_indices = @transform_1, window_bounds = array<i64: 1, 128, 128>}, {transform_indices = @transform_2, window_bounds = array<i64: 1, 128>}, {transform_indices = @transform_3, window_bounds = array<i64: 1, 128>}, {transform_indices = @transform_4, window_bounds = array<i64: 1, 128>}, {transform_indices = @transform_5, window_bounds = array<i64: 1, 64, 128>}]} {
    %c0_i32 = arith.constant 0 : i32
    %0 = arith.cmpi eq, %arg3, %c0_i32 : i32
    %1 = arith.extui %0 : i1 to i32
    %c0_i32_0 = arith.constant 0 : i32
    %2 = arith.cmpi ne, %1, %c0_i32_0 : i32
    scf.if %2 {
      %cst_12 = arith.constant 0.000000e+00 : f32
      %14 = vector.broadcast %cst_12 : f32 to vector<64x128xf32>
      %c0_13 = arith.constant 0 : index
      %c0_14 = arith.constant 0 : index
      %15 = vector.load %arg10[%c0_13, %c0_14] : memref<64x128xf32, #tpu.memory_space<vmem>>, vector<64x128xf32>
      tpu.vector_store %arg10[%c0_13, %c0_14], %14 {strides = array<i32>} : memref<64x128xf32, #tpu.memory_space<vmem>>, vector<64x128xf32>,
    } else {
    }
    %c0 = arith.constant 0 : index
    %c0_1 = arith.constant 0 : index
    %3 = vector.load %arg10[%c0, %c0_1] : memref<64x128xf32, #tpu.memory_space<vmem>>, vector<64x128xf32>
    %c0_2 = arith.constant 0 : index
    %c0_3 = arith.constant 0 : index
    %c0_4 = arith.constant 0 : index
    %4 = vector.load %arg4[%c0_2, %c0_3, %c0_4] : memref<1x64x128xbf16, #tpu.memory_space<vmem>>, vector<1x64x128xbf16>
    %5 = vector.shape_cast %4 : vector<1x64x128xbf16> to vector<64x128xbf16>
    %c0_5 = arith.constant 0 : index
    %c0_6 = arith.constant 0 : index
    %c0_7 = arith.constant 0 : index
    %6 = vector.load %arg5[%c0_5, %c0_6, %c0_7] : memref<1x128x128xbf16, #tpu.memory_space<vmem>>, vector<1x128x128xbf16>
    %7 = vector.shape_cast %6 : vector<1x128x128xbf16> to vector<128x128xbf16>
    %cst = arith.constant dense<0.000000e+00> : vector<64x128xf32>
    %8 = tpu.matmul %5, %7, %cst {dimension_numbers = #tpu.dot_dimension_numbers<[1], [0], [0], [1], [0, 0, 1, 1], [], []>} : vector<64x128xbf16>, vector<128x128xbf16>, vector<64x128xf32> -> vector<64x128xf32>
    %9 = arith.addf %3, %8 : vector<64x128xf32>
    %c0_8 = arith.constant 0 : index
    %c0_9 = arith.constant 0 : index
    %10 = vector.load %arg10[%c0_8, %c0_9] : memref<64x128xf32, #tpu.memory_space<vmem>>, vector<64x128xf32>
    tpu.vector_store %arg10[%c0_8, %c0_9], %9 {strides = array<i32>} : memref<64x128xf32, #tpu.memory_space<vmem>>, vector<64x128xf32>,
    %c0_i32_10 = arith.constant 0 : i32
    %11 = arith.cmpi eq, %arg3, %c0_i32_10 : i32
    %12 = arith.extui %11 : i1 to i32
    %c0_i32_11 = arith.constant 0 : i32
    %13 = arith.cmpi ne, %12, %c0_i32_11 : i32
    scf.if %13 {
      %c0_12 = arith.constant 0 : index
      %c0_13 = arith.constant 0 : index
      %14 = vector.load %arg10[%c0_12, %c0_13] : memref<64x128xf32, #tpu.memory_space<vmem>>, vector<64x128xf32>
      %c0_14 = arith.constant 0 : index
      %c0_15 = arith.constant 0 : index
      %15 = vector.load %arg6[%c0_14, %c0_15] : memref<1x128xf32, #tpu.memory_space<vmem>>, vector<1x128xf32>
      %16 = vector.broadcast %15 : vector<1x128xf32> to vector<64x128xf32>
      %17 = arith.addf %14, %16 : vector<64x128xf32>
      %cst_16 = arith.constant 0.000000e+00 : f32
      %18 = vector.broadcast %cst_16 : f32 to vector<64x128xf32>
      %19 = arith.maximumf %17, %18 : vector<64x128xf32>
      %c0_17 = arith.constant 0 : index
      %c0_18 = arith.constant 0 : index
      %20 = vector.load %arg7[%c0_17, %c0_18] : memref<1x128xf32, #tpu.memory_space<vmem>>, vector<1x128xf32>
      %21 = vector.broadcast %20 : vector<1x128xf32> to vector<64x128xf32>
      %22 = arith.mulf %19, %21 : vector<64x128xf32>
      %c0_19 = arith.constant 0 : index
      %c0_20 = arith.constant 0 : index
      %23 = vector.load %arg8[%c0_19, %c0_20] : memref<1x128xf32, #tpu.memory_space<vmem>>, vector<1x128xf32>
      %24 = vector.broadcast %23 : vector<1x128xf32> to vector<64x128xf32>
      %25 = arith.addf %22, %24 : vector<64x128xf32>
      %c0_21 = arith.constant 0 : index
      %c0_22 = arith.constant 0 : index
      %c0_23 = arith.constant 0 : index
      %26 = vector.load %arg9[%c0_21, %c0_22, %c0_23] : memref<1x64x128xf32, #tpu.memory_space<vmem>>, vector<1x64x128xf32>
      %27 = vector.shape_cast %26 : vector<1x64x128xf32> to vector<64x128xf32>
      %28 = vector.shape_cast %25 : vector<64x128xf32> to vector<1x64x128xf32>
      tpu.vector_store %arg9[%c0_21, %c0_22, %c0_23], %28 {strides = array<i32>} : memref<1x64x128xf32, #tpu.memory_space<vmem>>, vector<1x64x128xf32>,
    } else {
    }
    return
  }
  func.func @transform_0(%arg0: i32, %arg1: i32, %arg2: i32, %arg3: i32) -> (i32, i32, i32) {
    %c0_i32 = arith.constant 0 : i32
    return %arg0, %arg1, %arg3 : i32, i32, i32
  }
  func.func @transform_1(%arg0: i32, %arg1: i32, %arg2: i32, %arg3: i32) -> (i32, i32, i32) {
    %c0_i32 = arith.constant 0 : i32
    return %arg0, %arg3, %arg2 : i32, i32, i32
  }
  func.func @transform_2(%arg0: i32, %arg1: i32, %arg2: i32, %arg3: i32) -> (i32, i32) {
    %c0_i32 = arith.constant 0 : i32
    %c0_i32_0 = arith.constant 0 : i32
    return %c0_i32, %arg2 : i32, i32
  }
  func.func @transform_3(%arg0: i32, %arg1: i32, %arg2: i32, %arg3: i32) -> (i32, i32) {
    %c0_i32 = arith.constant 0 : i32
    %c0_i32_0 = arith.constant 0 : i32
    return %c0_i32, %arg2 : i32, i32
  }
  func.func @transform_4(%arg0: i32, %arg1: i32, %arg2: i32, %arg3: i32) -> (i32, i32) {
    %c0_i32 = arith.constant 0 : i32
    %c0_i32_0 = arith.constant 0 : i32
    return %c0_i32, %arg2 : i32, i32
  }
  func.func @transform_5(%arg0: i32, %arg1: i32, %arg2: i32, %arg3: i32) -> (i32, i32, i32) {
    %c0_i32 = arith.constant 0 : i32
    return %arg0, %arg1, %arg2 : i32, i32, i32
  }
}

module attributes {stable_mosaic.version = 11 : i64} {
  func.func @_fused_matmul_kernel(%arg0: i32, %arg1: i32, %arg2: i32, %arg3: i32, %arg4: memref<1x256x128xbf16, #tpu.memory_space<vmem>>, %arg5: memref<1x128x128xbf16, #tpu.memory_space<vmem>>, %arg6: memref<1x128xf32, #tpu.memory_space<vmem>>, %arg7: memref<1x128xf32, #tpu.memory_space<vmem>>, %arg8: memref<1x128xf32, #tpu.memory_space<vmem>>, %arg9: memref<1x256x128xf32, #tpu.memory_space<vmem>>, %arg10: memref<256x128xf32, #tpu.memory_space<vmem>>) attributes {dimension_semantics = [#tpu.dimension_semantics<parallel>, #tpu.dimension_semantics<parallel>, #tpu.dimension_semantics<parallel>, #tpu.dimension_semantics<arbitrary>], iteration_bounds = array<i64: 4, 1, 1, 1>, scalar_prefetch = 0 : i64, scratch_operands = 1 : i64, tpu.core_type = #tpu.core_type<tc>, window_params = [{transform_indices = @transform_0, window_bounds = array<i64: 1, 256, 128>}, {transform_indices = @transform_1, window_bounds = array<i64: 1, 128, 128>}, {transform_indices = @transform_2, window_bounds = array<i64: 1, 128>}, {transform_indices = @transform_3, window_bounds = array<i64: 1, 128>}, {transform_indices = @transform_4, window_bounds = array<i64: 1, 128>}, {transform_indices = @transform_5, window_bounds = array<i64: 1, 256, 128>}]} {
    %c0_i32 = arith.constant 0 : i32
    %0 = arith.cmpi eq, %arg3, %c0_i32 : i32
    %1 = arith.extui %0 : i1 to i32
    %c0_i32_0 = arith.constant 0 : i32
    %2 = arith.cmpi ne, %1, %c0_i32_0 : i32
    scf.if %2 {
      %cst_12 = arith.constant 0.000000e+00 : f32
      %14 = vector.broadcast %cst_12 : f32 to vector<256x128xf32>
      %c0_13 = arith.constant 0 : index
      %c0_14 = arith.constant 0 : index
      %15 = vector.load %arg10[%c0_13, %c0_14] : memref<256x128xf32, #tpu.memory_space<vmem>>, vector<256x128xf32>
      tpu.vector_store %arg10[%c0_13, %c0_14], %14 {strides = array<i32>} : memref<256x128xf32, #tpu.memory_space<vmem>>, vector<256x128xf32>,
    } else {
    }
    %c0 = arith.constant 0 : index
    %c0_1 = arith.constant 0 : index
    %3 = vector.load %arg10[%c0, %c0_1] : memref<256x128xf32, #tpu.memory_space<vmem>>, vector<256x128xf32>
    %c0_2 = arith.constant 0 : index
    %c0_3 = arith.constant 0 : index
    %c0_4 = arith.constant 0 : index
    %4 = vector.load %arg4[%c0_2, %c0_3, %c0_4] : memref<1x256x128xbf16, #tpu.memory_space<vmem>>, vector<1x256x128xbf16>
    %5 = vector.shape_cast %4 : vector<1x256x128xbf16> to vector<256x128xbf16>
    %c0_5 = arith.constant 0 : index
    %c0_6 = arith.constant 0 : index
    %c0_7 = arith.constant 0 : index
    %6 = vector.load %arg5[%c0_5, %c0_6, %c0_7] : memref<1x128x128xbf16, #tpu.memory_space<vmem>>, vector<1x128x128xbf16>
    %7 = vector.shape_cast %6 : vector<1x128x128xbf16> to vector<128x128xbf16>
    %cst = arith.constant dense<0.000000e+00> : vector<256x128xf32>
    %8 = tpu.matmul %5, %7, %cst {dimension_numbers = #tpu.dot_dimension_numbers<[1], [0], [0], [1], [0, 0, 1, 1], [], []>} : vector<256x128xbf16>, vector<128x128xbf16>, vector<256x128xf32> -> vector<256x128xf32>
    %9 = arith.addf %3, %8 : vector<256x128xf32>
    %c0_8 = arith.constant 0 : index
    %c0_9 = arith.constant 0 : index
    %10 = vector.load %arg10[%c0_8, %c0_9] : memref<256x128xf32, #tpu.memory_space<vmem>>, vector<256x128xf32>
    tpu.vector_store %arg10[%c0_8, %c0_9], %9 {strides = array<i32>} : memref<256x128xf32, #tpu.memory_space<vmem>>, vector<256x128xf32>,
    %c0_i32_10 = arith.constant 0 : i32
    %11 = arith.cmpi eq, %arg3, %c0_i32_10 : i32
    %12 = arith.extui %11 : i1 to i32
    %c0_i32_11 = arith.constant 0 : i32
    %13 = arith.cmpi ne, %12, %c0_i32_11 : i32
    scf.if %13 {
      %c0_12 = arith.constant 0 : index
      %c0_13 = arith.constant 0 : index
      %14 = vector.load %arg10[%c0_12, %c0_13] : memref<256x128xf32, #tpu.memory_space<vmem>>, vector<256x128xf32>
      %c0_14 = arith.constant 0 : index
      %c0_15 = arith.constant 0 : index
      %15 = vector.load %arg6[%c0_14, %c0_15] : memref<1x128xf32, #tpu.memory_space<vmem>>, vector<1x128xf32>
      %16 = vector.broadcast %15 : vector<1x128xf32> to vector<256x128xf32>
      %17 = arith.addf %14, %16 : vector<256x128xf32>
      %18 = arith.negf %17 : vector<256x128xf32>
      %19 = math.exp %18 : vector<256x128xf32>
      %cst_16 = arith.constant 1.000000e+00 : f32
      %20 = vector.broadcast %cst_16 : f32 to vector<256x128xf32>
      %21 = arith.addf %20, %19 : vector<256x128xf32>
      %22 = arith.divf %20, %21 : vector<256x128xf32>
      %c0_17 = arith.constant 0 : index
      %c0_18 = arith.constant 0 : index
      %23 = vector.load %arg7[%c0_17, %c0_18] : memref<1x128xf32, #tpu.memory_space<vmem>>, vector<1x128xf32>
      %24 = vector.broadcast %23 : vector<1x128xf32> to vector<256x128xf32>
      %25 = arith.mulf %22, %24 : vector<256x128xf32>
      %c0_19 = arith.constant 0 : index
      %c0_20 = arith.constant 0 : index
      %26 = vector.load %arg8[%c0_19, %c0_20] : memref<1x128xf32, #tpu.memory_space<vmem>>, vector<1x128xf32>
      %27 = vector.broadcast %26 : vector<1x128xf32> to vector<256x128xf32>
      %28 = arith.addf %25, %27 : vector<256x128xf32>
      %c0_21 = arith.constant 0 : index
      %c0_22 = arith.constant 0 : index
      %c0_23 = arith.constant 0 : index
      %29 = vector.load %arg9[%c0_21, %c0_22, %c0_23] : memref<1x256x128xf32, #tpu.memory_space<vmem>>, vector<1x256x128xf32>
      %30 = vector.shape_cast %29 : vector<1x256x128xf32> to vector<256x128xf32>
      %31 = vector.shape_cast %28 : vector<256x128xf32> to vector<1x256x128xf32>
      tpu.vector_store %arg9[%c0_21, %c0_22, %c0_23], %31 {strides = array<i32>} : memref<1x256x128xf32, #tpu.memory_space<vmem>>, vector<1x256x128xf32>,
    } else {
    }
    return
  }
  func.func @transform_0(%arg0: i32, %arg1: i32, %arg2: i32, %arg3: i32) -> (i32, i32, i32) {
    %c0_i32 = arith.constant 0 : i32
    return %arg0, %arg1, %arg3 : i32, i32, i32
  }
  func.func @transform_1(%arg0: i32, %arg1: i32, %arg2: i32, %arg3: i32) -> (i32, i32, i32) {
    %c0_i32 = arith.constant 0 : i32
    return %arg0, %arg3, %arg2 : i32, i32, i32
  }
  func.func @transform_2(%arg0: i32, %arg1: i32, %arg2: i32, %arg3: i32) -> (i32, i32) {
    %c0_i32 = arith.constant 0 : i32
    %c0_i32_0 = arith.constant 0 : i32
    return %c0_i32, %arg2 : i32, i32
  }
  func.func @transform_3(%arg0: i32, %arg1: i32, %arg2: i32, %arg3: i32) -> (i32, i32) {
    %c0_i32 = arith.constant 0 : i32
    %c0_i32_0 = arith.constant 0 : i32
    return %c0_i32, %arg2 : i32, i32
  }
  func.func @transform_4(%arg0: i32, %arg1: i32, %arg2: i32, %arg3: i32) -> (i32, i32) {
    %c0_i32 = arith.constant 0 : i32
    %c0_i32_0 = arith.constant 0 : i32
    return %c0_i32, %arg2 : i32, i32
  }
  func.func @transform_5(%arg0: i32, %arg1: i32, %arg2: i32, %arg3: i32) -> (i32, i32, i32) {
    %c0_i32 = arith.constant 0 : i32
    return %arg0, %arg1, %arg2 : i32, i32, i32
  }
}

</mosaic_0001>

<bundles_post_ra>
// kernel: ae_forward.6
= control target key start
LH: loop header
LB: loop body
LE: loop exit
PB: predicated region body
PF: predicated region fallthrough
CT: control target
= control target key end

     0   :  { %s1174_s1 = inlined_call_operand.vmem [shape: bf16[1,128,128], index: 1, kind: input, shape index: {}]   ;;  %s1175_s0 = inlined_call_operand.vmem [shape: bf16[1,256,128], index: 0, kind: input, shape index: {}]   ;;  %s1176_s2 = inlined_call_operand.vmem [shape: f32[1,128], index: 2, kind: input, shape index: {}]   ;;  %s1177_s3 = inlined_call_operand.vmem [shape: f32[1,128], index: 3, kind: input, shape index: {}]   ;;  %s1178_s4 = inlined_call_operand.vmem [shape: f32[1,128], index: 4, kind: input, shape index: {}]   ;;  %s1179_s5 = inlined_call_operand.vmem [shape: f32[1,256,128], index: 5, kind: output, shape index: {}]  }
   0x1   :  { %v841_v0 = vld [vmem:[%s1174_s1] sm:$0xff]   ;;  %v842_v1 = vld [vmem:[%s1174_s1 + $0x8] sm:$0xff]   ;;  %v843_v2 = vld [vmem:[%s1174_s1 + $0x10] sm:$0xff]  }
   0x2   :  { %777 = vmatprep.subr.bf16.mxu0 %v841_v0  ;;  %825 = vmatprep.subr.bf16.mxu1 %v841_v0  ;;  %v844_v3 = vld [vmem:[%s1174_s1 + $0x18] sm:$0xff]   ;;  %v849_v4 = vld [vmem:[%s1175_s0] sm:$0xff]   ;;  %v846_v7 = vld [vmem:[%s1174_s1 + $0x28] sm:$0xff]  }
   0x3   :  { %778 = vmatpush3.bf16.msra.mxu0 %v841_v0  ;;  %833 = vmatpush3.bf16.msra.mxu1 %v841_v0  ;;  %v850_v5 = vld [vmem:[%s1175_s0 + $0x40] sm:$0xff]   ;;  %v847_v8 = vld [vmem:[%s1174_s1 + $0x30] sm:$0xff]   ;;  %v848_v9 = vld [vmem:[%s1174_s1 + $0x38] sm:$0xff]  }
   0x4   :  { %779 = vmatprep.subr.bf16.mxu0 %v842_v1  ;;  %826 = vmatprep.subr.bf16.mxu1 %v842_v1  ;;  %v845_v6 = vld [vmem:[%s1174_s1 + $0x20] sm:$0xff]   ;;  %v851_v10 = vld [vmem:[%s1175_s0 + $0x8] sm:$0xff]   ;;  %v853_v12 = vld [vmem:[%s1175_s0 + $0x10] sm:$0xff]  }
   0x5   :  { %793 = vmatprep.mubr.bf16.mxu0 %v849_v4  ;;  %809 = vmatprep.mubr.bf16.mxu1 %v850_v5  ;;  %v852_v11 = vld [vmem:[%s1175_s0 + $0x48] sm:$0xff]   ;;  %v854_v13 = vld [vmem:[%s1175_s0 + $0x50] sm:$0xff]   ;;  %v855_v14 = vld [vmem:[%s1175_s0 + $0x18] sm:$0xff]  }
   0x6   :  { %v856_v15 = vld [vmem:[%s1175_s0 + $0x58] sm:$0xff]   ;;  %v857_v16 = vld [vmem:[%s1175_s0 + $0x20] sm:$0xff]   ;;  %v859_v18 = vld [vmem:[%s1175_s0 + $0x28] sm:$0xff]  }
   0x7   :  { %780 = vmatpush3.bf16.msra.mxu0 %v842_v1  ;;  %834 = vmatpush3.bf16.msra.mxu1 %v842_v1  ;;  %v858_v17 = vld [vmem:[%s1175_s0 + $0x60] sm:$0xff]   ;;  %v860_v19 = vld [vmem:[%s1175_s0 + $0x68] sm:$0xff]   ;;  %v861_v20 = vld [vmem:[%s1175_s0 + $0x30] sm:$0xff]  }
   0x8   :  { %781 = vmatprep.subr.bf16.mxu0 %v843_v2  ;;  %827 = vmatprep.subr.bf16.mxu1 %v843_v2  ;;  %v862_v21 = vld [vmem:[%s1175_s0 + $0x70] sm:$0xff]   ;;  %v863_v22 = vld [vmem:[%s1175_s0 + $0x38] sm:$0xff]   ;;  %v970_v24 = vld [vmem:[%s1176_s2] ss:$0 sm:$0xff] }
   0x9   :  { %v864_v23 = vld [vmem:[%s1175_s0 + $0x78] sm:$0xff]   ;;  %v977_v31 = vld [vmem:[%s1177_s3] ss:$0 sm:$0xff] }
   0xa   :  { %v986_v42 = vld [vmem:[%s1178_s4] ss:$0 sm:$0xff] }
   0xb   :  { %782 = vmatpush3.bf16.msra.mxu0 %v843_v2  ;;  %835 = vmatpush3.bf16.msra.mxu1 %v843_v2 }
   0xc   :  { %783 = vmatprep.subr.bf16.mxu0 %v844_v3  ;;  %828 = vmatprep.subr.bf16.mxu1 %v844_v3 }
   0xf   :  { %784 = vmatpush3.bf16.msra.mxu0 %v844_v3  ;;  %836 = vmatpush3.bf16.msra.mxu1 %v844_v3 }
  0x10   :  { %785 = vmatprep.subr.bf16.mxu0 %v845_v6  ;;  %829 = vmatprep.subr.bf16.mxu1 %v845_v6 }
  0x13   :  { %786 = vmatpush3.bf16.msra.mxu0 %v845_v6  ;;  %837 = vmatpush3.bf16.msra.mxu1 %v845_v6 }
  0x14   :  { %787 = vmatprep.subr.bf16.mxu0 %v846_v7  ;;  %830 = vmatprep.subr.bf16.mxu1 %v846_v7 }
  0x17   :  { %788 = vmatpush3.bf16.msra.mxu0 %v846_v7  ;;  %838 = vmatpush3.bf16.msra.mxu1 %v846_v7 }
  0x18   :  { %789 = vmatprep.subr.bf16.mxu0 %v847_v8  ;;  %831 = vmatprep.subr.bf16.mxu1 %v847_v8 }
  0x1b   :  { %790 = vmatpush3.bf16.msra.mxu0 %v847_v8  ;;  %839 = vmatpush3.bf16.msra.mxu1 %v847_v8 }
  0x1c   :  { %791 = vmatprep.subr.bf16.mxu0 %v848_v9  ;;  %832 = vmatprep.subr.bf16.mxu1 %v848_v9 }
  0x1f   :  { %792 = vmatpush3.bf16.msra.mxu0 %v848_v9  ;;  %840 = vmatpush3.bf16.msra.mxu1 %v848_v9 }
  0x22   :  { %794 = vmatmul.mubr.bf16.vlgmr.msra.gmra.mrb[0].mxu0 %v851_v10  ;;  %810 = vmatmul.mubr.bf16.vlgmr.msra.gmra.mrb[0].mxu1 %v852_v11 }
  0x23   :  { %797 = vmatprep.mubr.bf16.mxu0 %v853_v12  ;;  %813 = vmatprep.mubr.bf16.mxu1 %v854_v13 }
  0x2a   :  { %798 = vmatmul.mubr.bf16.gmra.mrb[4].mxu0 %v855_v14  ;;  %814 = vmatmul.mubr.bf16.gmra.mrb[4].mxu1 %v856_v15 }
  0x2b   :  { %801 = vmatprep.mubr.bf16.mxu0 %v857_v16  ;;  %817 = vmatprep.mubr.bf16.mxu1 %v858_v17 }
  0x32   :  { %802 = vmatmul.mubr.bf16.gmra.mrb[8].mxu0 %v859_v18  ;;  %818 = vmatmul.mubr.bf16.gmra.mrb[8].mxu1 %v860_v19 }
  0x33   :  { %805 = vmatprep.mubr.bf16.mxu0 %v861_v20  ;;  %821 = vmatprep.mubr.bf16.mxu1 %v862_v21 }
  0x3a   :  { %806 = vmatmul.mubr.bf16.gmra.mrb[12].mxu0 %v863_v22  ;;  %822 = vmatmul.mubr.bf16.gmra.mrb[12].mxu1 %v864_v23 }
  0xf5   :  { %v795_v25 = vpop.f32.mrb[0].mxu0  ;;  %v811_v26 = vpop.f32.mrb[0].mxu1 }
  0xf6   :  { %v550_v27 = vadd.f32 %v795_v25, %v970_v24  ;;  %v566_v28 = vadd.f32 %v811_v26, %v970_v24  ;;  %v315_v29 = vpop.f32.mrb[1].mxu0  ;;  %v379_v30 = vpop.f32.mrb[1].mxu1 }
  0xf7   :  { %v548_v32 = vadd.f32 %v970_v24, %v315_v29  ;;  %v564_v33 = vadd.f32 %v970_v24, %v379_v30  ;;  %v796_v34 = vpop.f32.mrb[2].mxu0  ;;  %v812_v35 = vpop.f32.mrb[2].mxu1 }
  0xf8   :  { %v582_v36 = vmax.f32 %v550_v27, 0.0  ;;  %v598_v37 = vmax.f32 %v566_v28, 0.0  ;;  %v551_v38 = vadd.f32 %v796_v34, %v970_v24  ;;  %v567_v39 = vadd.f32 %v812_v35, %v970_v24  ;;  %v318_v40 = vpop.f32.mrb[3].mxu0  ;;  %v382_v41 = vpop.f32.mrb[3].mxu1 }
  0xf9   :  { %v580_v43 = vmax.f32 %v548_v32, 0.0  ;;  %v596_v44 = vmax.f32 %v564_v33, 0.0  ;;  %v549_v45 = vadd.f32 %v970_v24, %v318_v40  ;;  %v565_v46 = vadd.f32 %v970_v24, %v382_v41 }
  0xfa   :  { %v621_v47 = vmul.f32 %v977_v31, %v582_v36  ;;  %v637_v48 = vmul.f32 %v977_v31, %v598_v37  ;;  %v583_v49 = vmax.f32 %v551_v38, 0.0  ;;  %v599_v50 = vmax.f32 %v567_v39, 0.0 }
  0xfb   :  { %v619_v51 = vmul.f32 %v977_v31, %v580_v43  ;;  %v635_v52 = vmul.f32 %v977_v31, %v596_v44  ;;  %v581_v53 = vmax.f32 %v549_v45, 0.0  ;;  %v597_v54 = vmax.f32 %v565_v46, 0.0 }
  0xfc   :  { %v660_v55 = vadd.f32 %v986_v42, %v621_v47  ;;  %v676_v56 = vadd.f32 %v986_v42, %v637_v48  ;;  %v622_v57 = vmul.f32 %v977_v31, %v583_v49  ;;  %v638_v58 = vmul.f32 %v977_v31, %v599_v50 }
  0xfd   :  { %v658_v59 = vadd.f32 %v986_v42, %v619_v51  ;;  %v674_v60 = vadd.f32 %v986_v42, %v635_v52  ;;  %v620_v61 = vmul.f32 %v977_v31, %v581_v53  ;;  %v636_v62 = vmul.f32 %v977_v31, %v597_v54  ;;  %v799_v63 = vpop.f32.mrb[4].mxu0  ;;  %v815_v0 = vpop.f32.mrb[4].mxu1 }
  0xfe   :  { %692 = vst [vmem:[%s1179_s5 + $0x10] sm:$0xff] %v660_v55  ;;  %708 = vst [vmem:[%s1179_s5 + $0x90] sm:$0xff] %v676_v56  ;;  %v661_v1 = vadd.f32 %v986_v42, %v622_v57  ;;  %v677_v2 = vadd.f32 %v986_v42, %v638_v58  ;;  %v554_v3 = vadd.f32 %v799_v63, %v970_v24  ;;  %v331_v5 = vpop.f32.mrb[5].mxu0  ;;  %v395_v6 = vpop.f32.mrb[5].mxu1 }
  0xff   :  { %v570_v4 = vadd.f32 %v815_v0, %v970_v24  ;;  %690 = vst [vmem:[%s1179_s5] sm:$0xff] %v658_v59  ;;  %706 = vst [vmem:[%s1179_s5 + $0x80] sm:$0xff] %v674_v60  ;;  %v659_v7 = vadd.f32 %v986_v42, %v620_v61  ;;  %v675_v8 = vadd.f32 %v986_v42, %v636_v62  ;;  %v800_v11 = vpop.f32.mrb[6].mxu0  ;;  %v816_v12 = vpop.f32.mrb[6].mxu1 }
 0x100   :  { %v552_v9 = vadd.f32 %v970_v24, %v331_v5  ;;  %v568_v10 = vadd.f32 %v970_v24, %v395_v6  ;;  %693 = vst [vmem:[%s1179_s5 + $0x18] sm:$0xff] %v661_v1  ;;  %709 = vst [vmem:[%s1179_s5 + $0x98] sm:$0xff] %v677_v2  ;;  %v586_v13 = vmax.f32 %v554_v3, 0.0  ;;  %v555_v15 = vadd.f32 %v800_v11, %v970_v24  ;;  %v334_v17 = vpop.f32.mrb[7].mxu0  ;;  %v398_v18 = vpop.f32.mrb[7].mxu1 }
 0x101   :  { %v602_v14 = vmax.f32 %v570_v4, 0.0  ;;  %v571_v16 = vadd.f32 %v816_v12, %v970_v24  ;;  %691 = vst [vmem:[%s1179_s5 + $0x8] sm:$0xff] %v659_v7  ;;  %707 = vst [vmem:[%s1179_s5 + $0x88] sm:$0xff] %v675_v8  ;;  %v553_v21 = vadd.f32 %v970_v24, %v334_v17  ;;  %v569_v22 = vadd.f32 %v970_v24, %v398_v18 }
 0x102   :  { %v584_v19 = vmax.f32 %v552_v9, 0.0  ;;  %v600_v20 = vmax.f32 %v568_v10, 0.0  ;;  %v625_v23 = vmul.f32 %v977_v31, %v586_v13  ;;  %v587_v26 = vmax.f32 %v555_v15, 0.0 }
 0x103   :  { %v641_v25 = vmul.f32 %v977_v31, %v602_v14  ;;  %v603_v27 = vmax.f32 %v571_v16, 0.0  ;;  %v585_v30 = vmax.f32 %v553_v21, 0.0  ;;  %v601_v32 = vmax.f32 %v569_v22, 0.0 }
 0x104   :  { %v623_v28 = vmul.f32 %v977_v31, %v584_v19  ;;  %v639_v29 = vmul.f32 %v977_v31, %v600_v20  ;;  %v664_v33 = vadd.f32 %v986_v42, %v625_v23  ;;  %v626_v35 = vmul.f32 %v977_v31, %v587_v26 }
 0x105   :  { %v680_v34 = vadd.f32 %v986_v42, %v641_v25  ;;  %v642_v36 = vmul.f32 %v977_v31, %v603_v27  ;;  %v624_v39 = vmul.f32 %v977_v31, %v585_v30  ;;  %v640_v40 = vmul.f32 %v977_v31, %v601_v32  ;;  %v803_v41 = vpop.f32.mrb[8].mxu0  ;;  %v819_v43 = vpop.f32.mrb[8].mxu1 }
 0x106   :  { %v662_v37 = vadd.f32 %v986_v42, %v623_v28  ;;  %v678_v38 = vadd.f32 %v986_v42, %v639_v29  ;;  %696 = vst [vmem:[%s1179_s5 + $0x30] sm:$0xff] %v664_v33  ;;  %v665_v44 = vadd.f32 %v986_v42, %v626_v35  ;;  %v558_v46 = vadd.f32 %v803_v41, %v970_v24  ;;  %v347_v48 = vpop.f32.mrb[9].mxu0  ;;  %v411_v49 = vpop.f32.mrb[9].mxu1 }
 0x107   :  { %712 = vst [vmem:[%s1179_s5 + $0xb0] sm:$0xff] %v680_v34  ;;  %v681_v45 = vadd.f32 %v986_v42, %v642_v36  ;;  %v574_v47 = vadd.f32 %v819_v43, %v970_v24  ;;  %v663_v50 = vadd.f32 %v986_v42, %v624_v39  ;;  %v679_v51 = vadd.f32 %v986_v42, %v640_v40  ;;  %v804_v54 = vpop.f32.mrb[10].mxu0  ;;  %v820_v55 = vpop.f32.mrb[10].mxu1 }
 0x108   :  { %694 = vst [vmem:[%s1179_s5 + $0x20] sm:$0xff] %v662_v37  ;;  %710 = vst [vmem:[%s1179_s5 + $0xa0] sm:$0xff] %v678_v38  ;;  %v556_v52 = vadd.f32 %v970_v24, %v347_v48  ;;  %v572_v53 = vadd.f32 %v970_v24, %v411_v49  ;;  %v590_v56 = vmax.f32 %v558_v46, 0.0  ;;  %v559_v58 = vadd.f32 %v804_v54, %v970_v24  ;;  %v350_v60 = vpop.f32.mrb[11].mxu0  ;;  %v414_v61 = vpop.f32.mrb[11].mxu1 }
 0x109   :  { %697 = vst [vmem:[%s1179_s5 + $0x38] sm:$0xff] %v665_v44  ;;  %713 = vst [vmem:[%s1179_s5 + $0xb8] sm:$0xff] %v681_v45  ;;  %v606_v57 = vmax.f32 %v574_v47, 0.0  ;;  %v575_v59 = vadd.f32 %v820_v55, %v970_v24  ;;  %v557_v0 = vadd.f32 %v970_v24, %v350_v60  ;;  %v573_v1 = vadd.f32 %v970_v24, %v414_v61 }
 0x10a   :  { %695 = vst [vmem:[%s1179_s5 + $0x28] sm:$0xff] %v663_v50  ;;  %711 = vst [vmem:[%s1179_s5 + $0xa8] sm:$0xff] %v679_v51  ;;  %v588_v62 = vmax.f32 %v556_v52, 0.0  ;;  %v604_v63 = vmax.f32 %v572_v53, 0.0  ;;  %v629_v2 = vmul.f32 %v977_v31, %v590_v56  ;;  %v591_v4 = vmax.f32 %v559_v58, 0.0 }
 0x10b   :  { %v645_v3 = vmul.f32 %v977_v31, %v606_v57  ;;  %v607_v5 = vmax.f32 %v575_v59, 0.0  ;;  %v589_v8 = vmax.f32 %v557_v0, 0.0  ;;  %v605_v9 = vmax.f32 %v573_v1, 0.0 }
 0x10c   :  { %v627_v6 = vmul.f32 %v977_v31, %v588_v62  ;;  %v643_v7 = vmul.f32 %v977_v31, %v604_v63  ;;  %v668_v10 = vadd.f32 %v986_v42, %v629_v2  ;;  %v630_v12 = vmul.f32 %v977_v31, %v591_v4 }
 0x10d   :  { %v684_v11 = vadd.f32 %v986_v42, %v645_v3  ;;  %v646_v13 = vmul.f32 %v977_v31, %v607_v5  ;;  %v628_v16 = vmul.f32 %v977_v31, %v589_v8  ;;  %v644_v17 = vmul.f32 %v977_v31, %v605_v9  ;;  %v807_v18 = vpop.f32.mrb[12].mxu0  ;;  %v823_v19 = vpop.f32.mrb[12].mxu1 }
 0x10e   :  { %v666_v14 = vadd.f32 %v986_v42, %v627_v6  ;;  %v682_v15 = vadd.f32 %v986_v42, %v643_v7  ;;  %700 = vst [vmem:[%s1179_s5 + $0x50] sm:$0xff] %v668_v10  ;;  %v669_v20 = vadd.f32 %v986_v42, %v630_v12  ;;  %v562_v22 = vadd.f32 %v807_v18, %v970_v24  ;;  %v363_v25 = vpop.f32.mrb[13].mxu0  ;;  %v427_v26 = vpop.f32.mrb[13].mxu1 }
 0x10f   :  { %716 = vst [vmem:[%s1179_s5 + $0xd0] sm:$0xff] %v684_v11  ;;  %v685_v21 = vadd.f32 %v986_v42, %v646_v13  ;;  %v578_v23 = vadd.f32 %v823_v19, %v970_v24  ;;  %v667_v27 = vadd.f32 %v986_v42, %v628_v16  ;;  %v683_v28 = vadd.f32 %v986_v42, %v644_v17  ;;  %v808_v32 = vpop.f32.mrb[14].mxu0  ;;  %v824_v33 = vpop.f32.mrb[14].mxu1 }
 0x110   :  { %698 = vst [vmem:[%s1179_s5 + $0x40] sm:$0xff] %v666_v14  ;;  %714 = vst [vmem:[%s1179_s5 + $0xc0] sm:$0xff] %v682_v15  ;;  %v560_v29 = vadd.f32 %v970_v24, %v363_v25  ;;  %v576_v30 = vadd.f32 %v970_v24, %v427_v26  ;;  %v594_v34 = vmax.f32 %v562_v22, 0.0  ;;  %v563_v36 = vadd.f32 %v808_v32, %v970_v24  ;;  %v366_v38 = vpop.f32.mrb[15].mxu0  ;;  %v430_v39 = vpop.f32.mrb[15].mxu1 }
 0x111   :  { %701 = vst [vmem:[%s1179_s5 + $0x58] sm:$0xff] %v669_v20  ;;  %717 = vst [vmem:[%s1179_s5 + $0xd8] sm:$0xff] %v685_v21  ;;  %v610_v35 = vmax.f32 %v578_v23, 0.0  ;;  %v579_v37 = vadd.f32 %v824_v33, %v970_v24  ;;  %v561_v43 = vadd.f32 %v970_v24, %v366_v38  ;;  %v577_v44 = vadd.f32 %v970_v24, %v430_v39 }
 0x112   :  { %699 = vst [vmem:[%s1179_s5 + $0x48] sm:$0xff] %v667_v27  ;;  %715 = vst [vmem:[%s1179_s5 + $0xc8] sm:$0xff] %v683_v28  ;;  %v592_v40 = vmax.f32 %v560_v29, 0.0  ;;  %v608_v41 = vmax.f32 %v576_v30, 0.0  ;;  %v633_v45 = vmul.f32 %v977_v31, %v594_v34  ;;  %v595_v47 = vmax.f32 %v563_v36, 0.0 }
 0x113   :  { %v649_v46 = vmul.f32 %v977_v31, %v610_v35  ;;  %v611_v48 = vmax.f32 %v579_v37, 0.0  ;;  %v593_v51 = vmax.f32 %v561_v43, 0.0  ;;  %v609_v52 = vmax.f32 %v577_v44, 0.0 }
 0x114   :  { %v631_v49 = vmul.f32 %v977_v31, %v592_v40  ;;  %v647_v50 = vmul.f32 %v977_v31, %v608_v41  ;;  %v672_v53 = vadd.f32 %v986_v42, %v633_v45  ;;  %v634_v55 = vmul.f32 %v977_v31, %v595_v47 }
 0x115   :  { %v688_v54 = vadd.f32 %v986_v42, %v649_v46  ;;  %v650_v24 = vmul.f32 %v977_v31, %v611_v48  ;;  %v632_v58 = vmul.f32 %v977_v31, %v593_v51  ;;  %v648_v59 = vmul.f32 %v977_v31, %v609_v52 }
 0x116   :  { %v670_v56 = vadd.f32 %v986_v42, %v631_v49  ;;  %v686_v57 = vadd.f32 %v986_v42, %v647_v50  ;;  %704 = vst [vmem:[%s1179_s5 + $0x70] sm:$0xff] %v672_v53  ;;  %v673_v60 = vadd.f32 %v986_v42, %v634_v55 }
 0x117   :  { %720 = vst [vmem:[%s1179_s5 + $0xf0] sm:$0xff] %v688_v54  ;;  %v689_v61 = vadd.f32 %v986_v42, %v650_v24  ;;  %v671_v31 = vadd.f32 %v986_v42, %v632_v58  ;;  %v687_v62 = vadd.f32 %v986_v42, %v648_v59 }
 0x118   :  { %702 = vst [vmem:[%s1179_s5 + $0x60] sm:$0xff] %v670_v56  ;;  %718 = vst [vmem:[%s1179_s5 + $0xe0] sm:$0xff] %v686_v57 }
 0x119   :  { %705 = vst [vmem:[%s1179_s5 + $0x78] sm:$0xff] %v673_v60  ;;  %721 = vst [vmem:[%s1179_s5 + $0xf8] sm:$0xff] %v689_v61 }
 0x11a   :  { %703 = vst [vmem:[%s1179_s5 + $0x68] sm:$0xff] %v671_v31  ;;  %719 = vst [vmem:[%s1179_s5 + $0xe8] sm:$0xff] %v687_v62 }

// kernel: tile.13
= control target key start
LH: loop header
LB: loop body
LE: loop exit
PB: predicated region body
PF: predicated region fallthrough
CT: control target
= control target key end

     0   :  { %s40_s0 = inlined_call_operand.vmem [shape: f32[8], index: 0, kind: input, shape index: {}]   ;;  %s41_s1 = inlined_call_operand.vmem [shape: f32[32,8], index: 1, kind: output, shape index: {}]  }
   0x1   :  { %v4_v0 = vld [vmem:[%s40_s0] ss:$0 sm:$0xff] }
   0x2   :  { %5 = vst [vmem:[%s41_s1] sm:$0xff] %v4_v0  ;;  %12 = vst [vmem:[%s41_s1 + $0x8] sm:$0xff] %v4_v0 }
   0x3   :  { %13 = vst [vmem:[%s41_s1 + $0x10] sm:$0xff] %v4_v0  ;;  %14 = vst [vmem:[%s41_s1 + $0x18] sm:$0xff] %v4_v0 }

// kernel: tile.18
= control target key start
LH: loop header
LB: loop body
LE: loop exit
PB: predicated region body
PF: predicated region fallthrough
CT: control target
= control target key end

     0   :  { %s7_s6 = smov 3  ;;  %s21_s9 = smov 3  ;;  %vm4_vm0 = vcmask 64512   ;;  %vm11_vm1 = vcmask 1048512   ;;  %vm18_vm2 = vcmask 982912   ;;  %vm25_vm3 = vcmask 917312   ;;  %s232_s0 = inlined_call_operand.vmem [shape: f32[32,8], index: 0, kind: input, shape index: {}]   ;;  %s233_s1 = inlined_call_operand.vmem [shape: f32[1,256], index: 1, kind: output, shape index: {}]  }
   0x1   :  { %v122_v0 = vld [vmem:[%s232_s0 + $0xf] ss:$16 sm:%s7_s6]   ;;  %s153_s10 = smov 120   ;;  %v124_v1 = vld [vmem:[%s232_s0 + $0xd] ss:$16 sm:%s21_s9]   ;;  %s14_s13 = smov 3 }
   0x2   :  { %9 = vrot.lane.b32.xlu0 %v122_v0, %s153_s10  ;;  %s154_s14 = smov 104   ;;  %v123_v2 = vld [vmem:[%s232_s0 + $0xe] ss:$16 sm:%s14_s13]   ;;  %s28_s17 = smov 3  ;;  %vm32_vm4 = vcmask 851712   ;;  %vm39_vm5 = vcmask 786112  }
   0x3   :  { %23 = vrot.lane.b32.xlu1 %v124_v1, %s154_s14  ;;  %v125_v3 = vld [vmem:[%s232_s0 + $0xc] ss:$16 sm:%s28_s17]   ;;  %s35_s20 = smov 3  ;;  %s42_s21 = smov 3  ;;  %vm46_vm6 = vcmask 720512   ;;  %vm53_vm7 = vcmask 654912  }
   0x4   :  { %s155_s22 = smov 112   ;;  %s156_s23 = smov 96   ;;  %v126_v4 = vld [vmem:[%s232_s0 + $0xb] ss:$16 sm:%s35_s20]   ;;  %v127_v5 = vld [vmem:[%s232_s0 + $0xa] ss:$16 sm:%s42_s21]  }
   0x5   :  { %s49_s28 = smov 3  ;;  %s56_s29 = smov 3  ;;  %vm60_vm8 = vcmask 589312   ;;  %vm67_vm9 = vcmask 523712   ;;  %vm74_vm10 = vcmask 458112   ;;  %vm81_vm11 = vcmask 392512  }
   0x6   :  { %16 = vrot.lane.b32.xlu0 %v123_v2, %s155_s22  ;;  %s157_s30 = smov 88   ;;  %s158_s2 = smov 80   ;;  %v128_v6 = vld [vmem:[%s232_s0 + $0x9] ss:$16 sm:%s49_s28]   ;;  %vm88_vm12 = vcmask 326912   ;;  %vm95_vm13 = vcmask 261312  }
   0x7   :  { %30 = vrot.lane.b32.xlu1 %v125_v3, %s156_s23  ;;  %v129_v7 = vld [vmem:[%s232_s0 + $0x8] ss:$16 sm:%s56_s29]   ;;  %s63_s7 = smov 3  ;;  %s70_s8 = smov 3  ;;  %vm102_vm14 = vcmask 195712   ;;  %vm109_vm15 = vcmask 130112  }
   0x8   :  { %s159_s9 = smov 72   ;;  %s160_s10 = smov 64   ;;  %v130_v8 = vld [vmem:[%s232_s0 + $0x7] ss:$16 sm:%s63_s7]   ;;  %v131_v9 = vld [vmem:[%s232_s0 + $0x6] ss:$16 sm:%s70_s8]  }
   0x9   :  { %s2_s13 = smov 3  ;;  %s77_s16 = smov 3 }
   0xa   :  { %37 = vrot.lane.b32.xlu0 %v126_v4, %s157_s30  ;;  %v3_v10 = vld [vmem:[%s232_s0] ss:$16 sm:%s2_s13]   ;;  %s84_s19 = smov 3  ;;  %s161_s20 = smov 56  }
   0xb   :  { %44 = vrot.lane.b32.xlu1 %v127_v5, %s158_s2  ;;  %5 = vst.msk [vmem:[#allocation0] ss:$8 sm:$0x3] %vm4_vm0, %v3_v10   ;;  %s162_s21 = smov 48   ;;  %v132_v11 = vld [vmem:[%s232_s0 + $0x5] ss:$16 sm:%s77_s16]  }
   0xc   :  { %v133_v12 = vld [vmem:[%s232_s0 + $0x4] ss:$16 sm:%s84_s19]   ;;  %s91_s26 = smov 3  ;;  %s98_s27 = smov 3 }
   0xd   :  { %s163_s28 = smov 40   ;;  %s164_s29 = smov 32   ;;  %v134_v13 = vld [vmem:[%s232_s0 + $0x3] ss:$16 sm:%s91_s26]   ;;  %v135_v14 = vld [vmem:[%s232_s0 + $0x2] ss:$16 sm:%s98_s27]  }
   0xe   :  { %51 = vrot.lane.b32.xlu0 %v128_v6, %s159_s9  ;;  %s105_s5 = smov 3  ;;  %s165_s6 = smov 24  }
   0xf   :  { %58 = vrot.lane.b32.xlu1 %v129_v7, %s160_s10  ;;  %s166_s7 = smov 16   ;;  %v136_v15 = vld [vmem:[%s232_s0 + $0x1] ss:$16 sm:%s105_s5]   ;;  %s167_s0 = smov 8  }
  0x12   :  { %65 = vrot.lane.b32.xlu0 %v130_v8, %s161_s20 }
  0x13   :  { %72 = vrot.lane.b32.xlu1 %v131_v9, %s162_s21 }
  0x16   :  { %79 = vrot.lane.b32.xlu0 %v132_v11, %s163_s28 }
  0x17   :  { %86 = vrot.lane.b32.xlu1 %v133_v12, %s164_s29 }
  0x1a   :  { %93 = vrot.lane.b32.xlu0 %v134_v13, %s165_s6 }
  0x1b   :  { %100 = vrot.lane.b32.xlu1 %v135_v14, %s166_s7 }
  0x1e   :  { %107 = vrot.lane.b32.xlu0 %v136_v15, %s167_s0 }
  0x74   :  { %v10_v16 = vpop.permute.xlu0 %9  }
  0x75   :  { %12 = vst.msk [vmem:[#allocation0] ss:$8 sm:$0x3] %vm11_vm1, %v10_v16   ;;  %v24_v17 = vpop.permute.xlu1 %23  }
  0x78   :  { %v17_v18 = vpop.permute.xlu0 %16  }
  0x79   :  { %19 = vst.msk [vmem:[#allocation0] ss:$8 sm:$0x3] %vm18_vm2, %v17_v18   ;;  %v31_v19 = vpop.permute.xlu1 %30  }
  0x7a   :  { %26 = vst.msk [vmem:[#allocation0] ss:$8 sm:$0x3] %vm25_vm3, %v24_v17  }
  0x7b   :  { %33 = vst.msk [vmem:[#allocation0] ss:$8 sm:$0x3] %vm32_vm4, %v31_v19  }
  0x7c   :  { %v38_v20 = vpop.permute.xlu0 %37  }
  0x7d   :  { %40 = vst.msk [vmem:[#allocation0] ss:$8 sm:$0x3] %vm39_vm5, %v38_v20   ;;  %v45_v21 = vpop.permute.xlu1 %44  }
  0x7e   :  { %47 = vst.msk [vmem:[#allocation0] ss:$8 sm:$0x3] %vm46_vm6, %v45_v21  }
  0x80   :  { %v52_v22 = vpop.permute.xlu0 %51  }
  0x81   :  { %54 = vst.msk [vmem:[#allocation0] ss:$8 sm:$0x3] %vm53_vm7, %v52_v22   ;;  %v59_v23 = vpop.permute.xlu1 %58  }
  0x82   :  { %61 = vst.msk [vmem:[#allocation0] ss:$8 sm:$0x3] %vm60_vm8, %v59_v23  }
  0x84   :  { %v66_v24 = vpop.permute.xlu0 %65  }
  0x85   :  { %68 = vst.msk [vmem:[#allocation0] ss:$8 sm:$0x3] %vm67_vm9, %v66_v24   ;;  %v73_v25 = vpop.permute.xlu1 %72  }
  0x86   :  { %75 = vst.msk [vmem:[#allocation0] ss:$8 sm:$0x3] %vm74_vm10, %v73_v25  }
  0x88   :  { %v80_v26 = vpop.permute.xlu0 %79  }
  0x89   :  { %82 = vst.msk [vmem:[#allocation0] ss:$8 sm:$0x3] %vm81_vm11, %v80_v26   ;;  %v87_v27 = vpop.permute.xlu1 %86  }
  0x8a   :  { %89 = vst.msk [vmem:[#allocation0] ss:$8 sm:$0x3] %vm88_vm12, %v87_v27  }
  0x8c   :  { %v94_v28 = vpop.permute.xlu0 %93  }
  0x8d   :  { %96 = vst.msk [vmem:[#allocation0] ss:$8 sm:$0x3] %vm95_vm13, %v94_v28   ;;  %v101_v29 = vpop.permute.xlu1 %100  }
  0x8e   :  { %103 = vst.msk [vmem:[#allocation0] ss:$8 sm:$0x3] %vm102_vm14, %v101_v29  }
  0x90   :  { %v108_v30 = vpop.permute.xlu0 %107  }
  0x91   :  { %110 = vst.msk [vmem:[#allocation0] ss:$8 sm:$0x3] %vm109_vm15, %v108_v30  }
  0x98   :  { %v114_v31 = vld [vmem:[#allocation0] sm:$0x1]  ;;  %v118_v32 = vld [vmem:[#allocation0 + $0x8] sm:$0x1] }
  0x99   :  { %116 = vst [vmem:[%s233_s1] sm:$0x1] %v114_v31  ;;  %137 = vst [vmem:[%s233_s1 + $0x1] sm:$0x1] %v118_v32 }

// kernel: squeeze.7
= control target key start
LH: loop header
LB: loop body
LE: loop exit
PB: predicated region body
PF: predicated region fallthrough
CT: control target
= control target key end

     0   :  { %vm34_vm0 = vcmask 64512   ;;  %s274_s10 = smov 104   ;;  %s275_s11 = smov 112   ;;  %s350_s0 = inlined_call_operand.vmem [shape: bf16[1,2,256], index: 0, kind: input, shape index: {}]   ;;  %s351_s1 = inlined_call_operand.vmem [shape: bf16[2,4,8,8], index: 1, kind: output, shape index: {}]  }
   0x1   :  { %v227_v0 = vld [vmem:[%s350_s0 + $0x1] sm:$0x1]  ;;  %v29_v1 = vld [vmem:[%s350_s0] sm:$0x1]  ;;  %s273_s0 = smov 120   ;;  %s276_s12 = smov 96  }
   0x2   :  { %v16_v2 = vunpack.c.l.bf16 %v227_v0  ;;  %v30_v3 = vunpack.c.l.bf16 %v29_v1  ;;  %s277_s13 = smov 88   ;;  %s278_s14 = smov 80  }
   0x3   :  { %s279_s15 = smov 72   ;;  %s280_s16 = smov 64  }
   0x4   :  { %19 = vst [vmem:[#allocation1 + $0x8] sm:$0x3] %v16_v2  ;;  %32 = vst [vmem:[#allocation1] sm:$0x3] %v30_v3  ;;  %s281_s17 = smov 56   ;;  %s282_s18 = smov 48  }
   0x5   :  { %s283_s19 = smov 40   ;;  %s284_s20 = smov 32  }
   0x6   :  { %s285_s21 = smov 24   ;;  %s286_s22 = smov 16  }
   0x7   :  { %s287_s23 = smov 8  }
   0xb   :  { %v45_v4 = vld.sshfl [vmem:[#allocation1] sm:$0xff pattern:$0x99999180]  }
   0xc   :  { %v33_v5 = vld [vmem:[#allocation1] sm:$0x3]   ;;  %46 = vrot.lane.b32.xlu0 %v45_v4, %s273_s0  ;;  %62 = vrot.lane.b32.xlu1 %v45_v4, %s274_s10  ;;  %v39_v6 = vld [vmem:[#allocation1 + $0x8] sm:$0x3]  }
   0xd   :  { %35 = vst.msk [vmem:[#allocation0] sm:$0x1] %vm34_vm0, %v33_v5   ;;  %37 = vst.msk [vmem:[#allocation0 + $0x1f] sm:$0x2] %vm34_vm0, %v33_v5  }
   0xe   :  { %42 = vst.msk [vmem:[#allocation0 + $0x10] sm:$0x1] %vm34_vm0, %v39_v6   ;;  %44 = vst.msk [vmem:[#allocation0 + $0x2f] sm:$0x2] %vm34_vm0, %v39_v6  }
  0x10   :  { %54 = vrot.lane.b32.xlu0 %v45_v4, %s275_s11  ;;  %70 = vrot.lane.b32.xlu1 %v45_v4, %s276_s12 }
  0x14   :  { %78 = vrot.lane.b32.xlu0 %v45_v4, %s277_s13  ;;  %86 = vrot.lane.b32.xlu1 %v45_v4, %s278_s14 }
  0x18   :  { %94 = vrot.lane.b32.xlu0 %v45_v4, %s279_s15  ;;  %102 = vrot.lane.b32.xlu1 %v45_v4, %s280_s16 }
  0x1c   :  { %110 = vrot.lane.b32.xlu0 %v45_v4, %s281_s17  ;;  %118 = vrot.lane.b32.xlu1 %v45_v4, %s282_s18 }
  0x20   :  { %126 = vrot.lane.b32.xlu0 %v45_v4, %s283_s19  ;;  %134 = vrot.lane.b32.xlu1 %v45_v4, %s284_s20 }
  0x24   :  { %142 = vrot.lane.b32.xlu0 %v45_v4, %s285_s21  ;;  %150 = vrot.lane.b32.xlu1 %v45_v4, %s286_s22 }
  0x28   :  { %158 = vrot.lane.b32.xlu0 %v45_v4, %s287_s23 }
  0x7e   :  { %v47_v7 = vpop.permute.xlu0 %46   ;;  %v63_v8 = vpop.permute.xlu1 %62  }
  0x7f   :  { %50 = vst.msk [vmem:[#allocation0 + $0x1] ss:$16 sm:$0x3] %vm34_vm0, %v47_v7   ;;  %52 = vst.msk [vmem:[#allocation0 + $0x1] ss:$16 sm:$0xc] %vm34_vm0, %v47_v7  }
  0x80   :  { %66 = vst.msk [vmem:[#allocation0 + $0x3] ss:$16 sm:$0x3] %vm34_vm0, %v63_v8   ;;  %68 = vst.msk [vmem:[#allocation0 + $0x3] ss:$16 sm:$0xc] %vm34_vm0, %v63_v8  }
  0x82   :  { %v55_v9 = vpop.permute.xlu0 %54   ;;  %v71_v10 = vpop.permute.xlu1 %70  }
  0x83   :  { %58 = vst.msk [vmem:[#allocation0 + $0x2] ss:$16 sm:$0x3] %vm34_vm0, %v55_v9   ;;  %60 = vst.msk [vmem:[#allocation0 + $0x2] ss:$16 sm:$0xc] %vm34_vm0, %v55_v9  }
  0x84   :  { %74 = vst.msk [vmem:[#allocation0 + $0x4] ss:$16 sm:$0x3] %vm34_vm0, %v71_v10   ;;  %76 = vst.msk [vmem:[#allocation0 + $0x4] ss:$16 sm:$0xc] %vm34_vm0, %v71_v10  }
  0x86   :  { %v79_v11 = vpop.permute.xlu0 %78   ;;  %v87_v12 = vpop.permute.xlu1 %86  }
  0x87   :  { %82 = vst.msk [vmem:[#allocation0 + $0x5] ss:$16 sm:$0x3] %vm34_vm0, %v79_v11   ;;  %84 = vst.msk [vmem:[#allocation0 + $0x5] ss:$16 sm:$0xc] %vm34_vm0, %v79_v11  }
  0x88   :  { %90 = vst.msk [vmem:[#allocation0 + $0x6] ss:$16 sm:$0x3] %vm34_vm0, %v87_v12   ;;  %92 = vst.msk [vmem:[#allocation0 + $0x6] ss:$16 sm:$0xc] %vm34_vm0, %v87_v12  }
  0x8a   :  { %v95_v13 = vpop.permute.xlu0 %94   ;;  %v103_v14 = vpop.permute.xlu1 %102  }
  0x8b   :  { %98 = vst.msk [vmem:[#allocation0 + $0x7] ss:$16 sm:$0x3] %vm34_vm0, %v95_v13   ;;  %100 = vst.msk [vmem:[#allocation0 + $0x7] ss:$16 sm:$0xc] %vm34_vm0, %v95_v13  }
  0x8c   :  { %106 = vst.msk [vmem:[#allocation0 + $0x8] ss:$16 sm:$0x3] %vm34_vm0, %v103_v14   ;;  %108 = vst.msk [vmem:[#allocation0 + $0x8] ss:$16 sm:$0xc] %vm34_vm0, %v103_v14  }
  0x8e   :  { %v111_v15 = vpop.permute.xlu0 %110   ;;  %v119_v16 = vpop.permute.xlu1 %118  }
  0x8f   :  { %114 = vst.msk [vmem:[#allocation0 + $0x9] ss:$16 sm:$0x3] %vm34_vm0, %v111_v15   ;;  %116 = vst.msk [vmem:[#allocation0 + $0x9] ss:$16 sm:$0xc] %vm34_vm0, %v111_v15  }
  0x90   :  { %122 = vst.msk [vmem:[#allocation0 + $0xa] ss:$16 sm:$0x3] %vm34_vm0, %v119_v16   ;;  %124 = vst.msk [vmem:[#allocation0 + $0xa] ss:$16 sm:$0xc] %vm34_vm0, %v119_v16  }
  0x92   :  { %v127_v17 = vpop.permute.xlu0 %126   ;;  %v135_v18 = vpop.permute.xlu1 %134   ;;  %v169_v22 = vld [vmem:[#allocation0] sm:$0xff]  ;;  %v180_v23 = vld [vmem:[#allocation0 + $0x10] sm:$0xff] }
  0x93   :  { %130 = vst.msk [vmem:[#allocation0 + $0xb] ss:$16 sm:$0x3] %vm34_vm0, %v127_v17   ;;  %132 = vst.msk [vmem:[#allocation0 + $0xb] ss:$16 sm:$0xc] %vm34_vm0, %v127_v17  }
  0x94   :  { %138 = vst.msk [vmem:[#allocation0 + $0xc] ss:$16 sm:$0x3] %vm34_vm0, %v135_v18   ;;  %140 = vst.msk [vmem:[#allocation0 + $0xc] ss:$16 sm:$0xc] %vm34_vm0, %v135_v18  }
  0x95   :  { %v194_v24 = vld [vmem:[#allocation0 + $0x20] sm:$0xff]  ;;  %v208_v28 = vld [vmem:[#allocation0 + $0x30] sm:$0xff] }
  0x96   :  { %v143_v19 = vpop.permute.xlu0 %142   ;;  %v151_v20 = vpop.permute.xlu1 %150  }
  0x97   :  { %146 = vst.msk [vmem:[#allocation0 + $0xd] ss:$16 sm:$0x3] %vm34_vm0, %v143_v19   ;;  %148 = vst.msk [vmem:[#allocation0 + $0xd] ss:$16 sm:$0xc] %vm34_vm0, %v143_v19  }
  0x98   :  { %154 = vst.msk [vmem:[#allocation0 + $0xe] ss:$16 sm:$0x3] %vm34_vm0, %v151_v20   ;;  %156 = vst.msk [vmem:[#allocation0 + $0xe] ss:$16 sm:$0xc] %vm34_vm0, %v151_v20  }
  0x9a   :  { %v159_v21 = vpop.permute.xlu0 %158  }
  0x9b   :  { %162 = vst.msk [vmem:[#allocation0 + $0xf] ss:$16 sm:$0x3] %vm34_vm0, %v159_v21   ;;  %164 = vst.msk [vmem:[#allocation0 + $0xf] ss:$16 sm:$0xc] %vm34_vm0, %v159_v21  }
  0xa2   :  { %v174_v25 = vld [vmem:[#allocation0 + $0x8] sm:$0xff]  ;;  %v187_v26 = vld [vmem:[#allocation0 + $0x18] sm:$0xff] }
  0xa3   :  { %v201_v27 = vld [vmem:[#allocation0 + $0x28] sm:$0xff]  ;;  %v238_v29 = vpack.c.bf16 %v174_v25, %v169_v22  ;;  %v243_v30 = vpack.c.bf16 %v187_v26, %v180_v23  ;;  %v215_v32 = vld [vmem:[#allocation0 + $0x38] sm:$0xff] }
  0xa4   :  { %v248_v31 = vpack.c.bf16 %v201_v27, %v194_v24  ;;  %v253_v33 = vpack.c.bf16 %v215_v32, %v208_v28 }
  0xa5   :  { %239 = vst [vmem:[%s351_s1] sm:$0xff] %v238_v29   ;;  %255 = vst [vmem:[%s351_s1 + $0x8] sm:$0xff] %v243_v30  }
  0xa6   :  { %256 = vst [vmem:[%s351_s1 + $0x10] sm:$0xff] %v248_v31   ;;  %257 = vst [vmem:[%s351_s1 + $0x18] sm:$0xff] %v253_v33  }

// kernel: ae_forward.7
= control target key start
LH: loop header
LB: loop body
LE: loop exit
PB: predicated region body
PF: predicated region fallthrough
CT: control target
= control target key end

     0   :  { %s472_s1 = inlined_call_operand.vmem [shape: bf16[1,128,128], index: 1, kind: input, shape index: {}]   ;;  %s473_s0 = inlined_call_operand.vmem [shape: bf16[1,64,128], index: 0, kind: input, shape index: {}]   ;;  %s474_s2 = inlined_call_operand.vmem [shape: f32[1,128], index: 2, kind: input, shape index: {}]   ;;  %s475_s3 = inlined_call_operand.vmem [shape: f32[1,128], index: 3, kind: input, shape index: {}]   ;;  %s476_s4 = inlined_call_operand.vmem [shape: f32[1,128], index: 4, kind: input, shape index: {}]   ;;  %s477_s5 = inlined_call_operand.vmem [shape: f32[1,64,128], index: 5, kind: output, shape index: {}]  }
   0x1   :  { %v361_v0 = vld [vmem:[%s472_s1] sm:$0xff]   ;;  %v362_v1 = vld [vmem:[%s472_s1 + $0x8] sm:$0xff]   ;;  %v363_v2 = vld [vmem:[%s472_s1 + $0x10] sm:$0xff]  }
   0x2   :  { %321 = vmatprep.subr.bf16.mxu0 %v361_v0  ;;  %345 = vmatprep.subr.bf16.mxu1 %v361_v0  ;;  %v364_v3 = vld [vmem:[%s472_s1 + $0x18] sm:$0xff]   ;;  %v369_v4 = vld [vmem:[%s473_s0] sm:$0xff]   ;;  %v370_v5 = vld [vmem:[%s473_s0 + $0x10] sm:$0xff]  }
   0x3   :  { %322 = vmatpush3.bf16.msra.mxu0 %v361_v0  ;;  %353 = vmatpush3.bf16.msra.mxu1 %v361_v0  ;;  %v365_v6 = vld [vmem:[%s472_s1 + $0x20] sm:$0xff]   ;;  %v366_v7 = vld [vmem:[%s472_s1 + $0x28] sm:$0xff]   ;;  %v367_v8 = vld [vmem:[%s472_s1 + $0x30] sm:$0xff]  }
   0x4   :  { %323 = vmatprep.subr.bf16.mxu0 %v362_v1  ;;  %346 = vmatprep.subr.bf16.mxu1 %v362_v1  ;;  %v368_v9 = vld [vmem:[%s472_s1 + $0x38] sm:$0xff]   ;;  %v371_v10 = vld [vmem:[%s473_s0 + $0x8] sm:$0xff]   ;;  %v306_v12 = vld [vmem:[%s474_s2] ss:$0 sm:$0xff] }
   0x5   :  { %337 = vmatprep.mubr.bf16.mxu0 %v369_v4  ;;  %341 = vmatprep.mubr.bf16.mxu1 %v370_v5  ;;  %v372_v11 = vld [vmem:[%s473_s0 + $0x18] sm:$0xff]   ;;  %v307_v19 = vld [vmem:[%s475_s3] ss:$0 sm:$0xff] }
   0x6   :  { %v308_v30 = vld [vmem:[%s476_s4] ss:$0 sm:$0xff] }
   0x7   :  { %324 = vmatpush3.bf16.msra.mxu0 %v362_v1  ;;  %354 = vmatpush3.bf16.msra.mxu1 %v362_v1 }
   0x8   :  { %325 = vmatprep.subr.bf16.mxu0 %v363_v2  ;;  %347 = vmatprep.subr.bf16.mxu1 %v363_v2 }
   0xb   :  { %326 = vmatpush3.bf16.msra.mxu0 %v363_v2  ;;  %355 = vmatpush3.bf16.msra.mxu1 %v363_v2 }
   0xc   :  { %327 = vmatprep.subr.bf16.mxu0 %v364_v3  ;;  %348 = vmatprep.subr.bf16.mxu1 %v364_v3 }
   0xf   :  { %328 = vmatpush3.bf16.msra.mxu0 %v364_v3  ;;  %356 = vmatpush3.bf16.msra.mxu1 %v364_v3 }
  0x10   :  { %329 = vmatprep.subr.bf16.mxu0 %v365_v6  ;;  %349 = vmatprep.subr.bf16.mxu1 %v365_v6 }
  0x13   :  { %330 = vmatpush3.bf16.msra.mxu0 %v365_v6  ;;  %357 = vmatpush3.bf16.msra.mxu1 %v365_v6 }
  0x14   :  { %331 = vmatprep.subr.bf16.mxu0 %v366_v7  ;;  %350 = vmatprep.subr.bf16.mxu1 %v366_v7 }
  0x17   :  { %332 = vmatpush3.bf16.msra.mxu0 %v366_v7  ;;  %358 = vmatpush3.bf16.msra.mxu1 %v366_v7 }
  0x18   :  { %333 = vmatprep.subr.bf16.mxu0 %v367_v8  ;;  %351 = vmatprep.subr.bf16.mxu1 %v367_v8 }
  0x1b   :  { %334 = vmatpush3.bf16.msra.mxu0 %v367_v8  ;;  %359 = vmatpush3.bf16.msra.mxu1 %v367_v8 }
  0x1c   :  { %335 = vmatprep.subr.bf16.mxu0 %v368_v9  ;;  %352 = vmatprep.subr.bf16.mxu1 %v368_v9 }
  0x1f   :  { %336 = vmatpush3.bf16.msra.mxu0 %v368_v9  ;;  %360 = vmatpush3.bf16.msra.mxu1 %v368_v9 }
  0x22   :  { %338 = vmatmul.mubr.bf16.vlgmr.msra.gmra.mrb[0].mxu0 %v371_v10  ;;  %342 = vmatmul.mubr.bf16.vlgmr.msra.gmra.mrb[0].mxu1 %v372_v11 }
  0xf5   :  { %v339_v13 = vpop.f32.mrb[0].mxu0  ;;  %v343_v14 = vpop.f32.mrb[0].mxu1 }
  0xf6   :  { %v238_v15 = vadd.f32 %v339_v13, %v306_v12  ;;  %v242_v16 = vadd.f32 %v343_v14, %v306_v12  ;;  %v171_v17 = vpop.f32.mrb[1].mxu0  ;;  %v187_v18 = vpop.f32.mrb[1].mxu1 }
  0xf7   :  { %v236_v20 = vadd.f32 %v306_v12, %v171_v17  ;;  %v240_v21 = vadd.f32 %v306_v12, %v187_v18  ;;  %v340_v22 = vpop.f32.mrb[2].mxu0  ;;  %v344_v23 = vpop.f32.mrb[2].mxu1 }
  0xf8   :  { %v246_v24 = vmax.f32 %v238_v15, 0.0  ;;  %v250_v25 = vmax.f32 %v242_v16, 0.0  ;;  %v239_v26 = vadd.f32 %v340_v22, %v306_v12  ;;  %v243_v27 = vadd.f32 %v344_v23, %v306_v12  ;;  %v174_v28 = vpop.f32.mrb[3].mxu0  ;;  %v190_v29 = vpop.f32.mrb[3].mxu1 }
  0xf9   :  { %v244_v31 = vmax.f32 %v236_v20, 0.0  ;;  %v248_v32 = vmax.f32 %v240_v21, 0.0  ;;  %v237_v33 = vadd.f32 %v306_v12, %v174_v28  ;;  %v241_v34 = vadd.f32 %v306_v12, %v190_v29 }
  0xfa   :  { %v261_v35 = vmul.f32 %v307_v19, %v246_v24  ;;  %v265_v36 = vmul.f32 %v307_v19, %v250_v25  ;;  %v247_v37 = vmax.f32 %v239_v26, 0.0  ;;  %v251_v38 = vmax.f32 %v243_v27, 0.0 }
  0xfb   :  { %v259_v39 = vmul.f32 %v307_v19, %v244_v31  ;;  %v263_v40 = vmul.f32 %v307_v19, %v248_v32  ;;  %v245_v41 = vmax.f32 %v237_v33, 0.0  ;;  %v249_v42 = vmax.f32 %v241_v34, 0.0 }
  0xfc   :  { %v276_v43 = vadd.f32 %v308_v30, %v261_v35  ;;  %v280_v44 = vadd.f32 %v308_v30, %v265_v36  ;;  %v262_v45 = vmul.f32 %v307_v19, %v247_v37  ;;  %v266_v46 = vmul.f32 %v307_v19, %v251_v38 }
  0xfd   :  { %v274_v47 = vadd.f32 %v308_v30, %v259_v39  ;;  %v278_v48 = vadd.f32 %v308_v30, %v263_v40  ;;  %v260_v49 = vmul.f32 %v307_v19, %v245_v41  ;;  %v264_v50 = vmul.f32 %v307_v19, %v249_v42 }
  0xfe   :  { %284 = vst [vmem:[%s477_s5 + $0x10] sm:$0xff] %v276_v43  ;;  %288 = vst [vmem:[%s477_s5 + $0x30] sm:$0xff] %v280_v44  ;;  %v277_v51 = vadd.f32 %v308_v30, %v262_v45  ;;  %v281_v52 = vadd.f32 %v308_v30, %v266_v46 }
  0xff   :  { %282 = vst [vmem:[%s477_s5] sm:$0xff] %v274_v47  ;;  %286 = vst [vmem:[%s477_s5 + $0x20] sm:$0xff] %v278_v48  ;;  %v275_v53 = vadd.f32 %v308_v30, %v260_v49  ;;  %v279_v54 = vadd.f32 %v308_v30, %v264_v50 }
 0x100   :  { %285 = vst [vmem:[%s477_s5 + $0x18] sm:$0xff] %v277_v51  ;;  %289 = vst [vmem:[%s477_s5 + $0x38] sm:$0xff] %v281_v52 }
 0x101   :  { %283 = vst [vmem:[%s477_s5 + $0x8] sm:$0xff] %v275_v53  ;;  %287 = vst [vmem:[%s477_s5 + $0x28] sm:$0xff] %v279_v54 }

// kernel: ae_forward.8
= control target key start
LH: loop header
LB: loop body
LE: loop exit
PB: predicated region body
PF: predicated region fallthrough
CT: control target
= control target key end

     0   :  { %s372_s1 = inlined_call_operand.vmem [shape: bf16[1,256,128], index: 1, kind: input, shape index: {}]   ;;  %s373_s0 = inlined_call_operand.vmem [shape: bf16[1,8,256], index: 0, kind: input, shape index: {}]   ;;  %s374_s2 = inlined_call_operand.vmem [shape: f32[1,128], index: 2, kind: input, shape index: {}]   ;;  %s375_s3 = inlined_call_operand.vmem [shape: f32[1,128], index: 3, kind: input, shape index: {}]   ;;  %s376_s4 = inlined_call_operand.vmem [shape: f32[1,8,128], index: 4, kind: output, shape index: {}]  }
   0x1   :  { %v269_v0 = vld [vmem:[%s372_s1 + $0x40] sm:$0xff]   ;;  %v271_v2 = vld [vmem:[%s372_s1 + $0x48] sm:$0xff]   ;;  %v273_v4 = vld [vmem:[%s372_s1 + $0x50] sm:$0xff]  }
   0x2   :  { %v270_v1 = vld [vmem:[%s372_s1] sm:$0xff]   ;;  %247 = vmatprep.subr.bf16.mxu0 %v269_v0  ;;  %v272_v3 = vld [vmem:[%s372_s1 + $0x8] sm:$0xff]   ;;  %v274_v5 = vld [vmem:[%s372_s1 + $0x10] sm:$0xff]  }
   0x3   :  { %248 = vmatpush3.bf16.msra.mxu0 %v270_v1  ;;  %v275_v6 = vld [vmem:[%s372_s1 + $0x58] sm:$0xff]   ;;  %v277_v8 = vld [vmem:[%s372_s1 + $0x60] sm:$0xff]   ;;  %v279_v10 = vld [vmem:[%s372_s1 + $0x68] sm:$0xff]  }
   0x4   :  { %249 = vmatprep.subr.bf16.mxu0 %v271_v2  ;;  %v276_v7 = vld [vmem:[%s372_s1 + $0x18] sm:$0xff]   ;;  %v278_v9 = vld [vmem:[%s372_s1 + $0x20] sm:$0xff]   ;;  %v280_v13 = vld [vmem:[%s372_s1 + $0x28] sm:$0xff]  }
   0x5   :  { %v24_v11 = vld [vmem:[%s373_s0] sm:$0xff]  ;;  %v281_v14 = vld [vmem:[%s372_s1 + $0x70] sm:$0xff]   ;;  %v283_v16 = vld [vmem:[%s372_s1 + $0x78] sm:$0xff]  }
   0x6   :  { %v228_v12 = vcombine.high %v24_v11, %v24_v11  ;;  %v282_v15 = vld [vmem:[%s372_s1 + $0x30] sm:$0xff]   ;;  %v284_v17 = vld [vmem:[%s372_s1 + $0x38] sm:$0xff]   ;;  %v227_v18 = vcombine.low %v24_v11, %v24_v11  ;;  %v245_v21 = vld [vmem:[%s374_s2] ss:$0 sm:$0xff] }
   0x7   :  { %250 = vmatpush3.bf16.msra.mxu0 %v272_v3  ;;  %v246_v24 = vld [vmem:[%s375_s3] ss:$0 sm:$0xff] }
   0x8   :  { %251 = vmatprep.subr.bf16.mxu0 %v273_v4  ;;  %192 = vmatprep.mubr.bf16.mxu0 %v228_v12 }
   0xb   :  { %252 = vmatpush3.bf16.msra.mxu0 %v274_v5 }
   0xc   :  { %253 = vmatprep.subr.bf16.mxu0 %v275_v6 }
   0xf   :  { %254 = vmatpush3.bf16.msra.mxu0 %v276_v7 }
  0x10   :  { %255 = vmatprep.subr.bf16.mxu0 %v277_v8 }
  0x13   :  { %256 = vmatpush3.bf16.msra.mxu0 %v278_v9 }
  0x14   :  { %257 = vmatprep.subr.bf16.mxu0 %v279_v10 }
  0x17   :  { %258 = vmatpush3.bf16.msra.mxu0 %v280_v13 }
  0x18   :  { %259 = vmatprep.subr.bf16.mxu0 %v281_v14 }
  0x1b   :  { %260 = vmatpush3.bf16.msra.mxu0 %v282_v15 }
  0x1c   :  { %261 = vmatprep.subr.bf16.mxu0 %v283_v16 }
  0x1f   :  { %262 = vmatpush3.bf16.msra.mxu0 %v284_v17 }
  0x22   :  { %193 = vmatmul.mubr.bf16.vlgmr.msra.gmra.mrb[0].mxu0 %v227_v18 }
  0xf5   :  { %v263_v19 = vpop.f32.mrb[0].mxu0 }
  0xf6   :  { %v264_v20 = vpop.f32.mrb[1].mxu0 }
  0xf7   :  { %v265_v22 = vadd.f32 %v264_v20, %v263_v19  ;;  %v266_v23 = vpop.f32.mrb[2].mxu0 }
  0xf8   :  { %v267_v25 = vpop.f32.mrb[3].mxu0 }
  0xf9   :  { %v213_v26 = vmul.f32 %v265_v22, %v245_v21 }
  0xfb   :  { %v221_v27 = vadd.f32 %v246_v24, %v213_v26 }
  0xfd   :  { %222 = vst [vmem:[%s376_s4] sm:$0xff] %v221_v27 }

// kernel: ae_forward.9
= control target key start
LH: loop header
LB: loop body
LE: loop exit
PB: predicated region body
PF: predicated region fallthrough
CT: control target
= control target key end

     0   :  { %v248_v1 = vmov 0   ;;  %v175_v18 = vlaneseq  ;;  %s337_s1 = inlined_call_operand.vmem [shape: bf16[1,128,256], index: 1, kind: input, shape index: {}]   ;;  %s338_s0 = inlined_call_operand.vmem [shape: bf16[1,8,128], index: 0, kind: input, shape index: {}]   ;;  %s339_s2 = inlined_call_operand.vmem [shape: f32[1,256], index: 2, kind: input, shape index: {}]   ;;  %s340_s3 = inlined_call_operand.vmem [shape: f32[1,256], index: 3, kind: input, shape index: {}]   ;;  %s341_s4 = inlined_call_operand.vmem [shape: f32[1,8,256], index: 4, kind: output, shape index: {}]  }
   0x1   :  { %v224_v0 = vld [vmem:[%s337_s1 + $0x4] ss:$8 sps:$4 sm:$0xff]   ;;  %155 = vmatprep.mubr.bf16.mxu0 %v248_v1  ;;  %v226_v2 = vld [vmem:[%s337_s1] ss:$8 sps:$4 sm:$0xff]   ;;  %v227_v3 = vld [vmem:[%s337_s1 + $0x14] ss:$8 sps:$4 sm:$0xff]  }
   0x2   :  { %123 = vmatprep.subr.bf16.mxu0 %v224_v0  ;;  %v229_v4 = vld [vmem:[%s337_s1 + $0x10] ss:$8 sps:$4 sm:$0xff]   ;;  %v230_v5 = vld [vmem:[%s337_s1 + $0x24] ss:$8 sps:$4 sm:$0xff]   ;;  %v232_v6 = vld [vmem:[%s337_s1 + $0x20] ss:$8 sps:$4 sm:$0xff]  }
   0x3   :  { %124 = vmatpush1.bf16.msra.mxu0 %v226_v2  ;;  %v233_v7 = vld [vmem:[%s337_s1 + $0x34] ss:$8 sps:$4 sm:$0xff]   ;;  %v235_v8 = vld [vmem:[%s337_s1 + $0x30] ss:$8 sps:$4 sm:$0xff]   ;;  %v236_v9 = vld [vmem:[%s337_s1 + $0x44] ss:$8 sps:$4 sm:$0xff]  }
   0x4   :  { %125 = vmatprep.subr.bf16.mxu0 %v227_v3  ;;  %v238_v10 = vld [vmem:[%s337_s1 + $0x40] ss:$8 sps:$4 sm:$0xff]   ;;  %v239_v11 = vld [vmem:[%s337_s1 + $0x54] ss:$8 sps:$4 sm:$0xff]   ;;  %v241_v12 = vld [vmem:[%s337_s1 + $0x50] ss:$8 sps:$4 sm:$0xff]  }
   0x5   :  { %v242_v13 = vld [vmem:[%s337_s1 + $0x64] ss:$8 sps:$4 sm:$0xff]   ;;  %v244_v14 = vld [vmem:[%s337_s1 + $0x60] ss:$8 sps:$4 sm:$0xff]   ;;  %v245_v15 = vld [vmem:[%s337_s1 + $0x74] ss:$8 sps:$4 sm:$0xff]  }
   0x6   :  { %v247_v16 = vld [vmem:[%s337_s1 + $0x70] ss:$8 sps:$4 sm:$0xff]   ;;  %v26_v17 = vld [vmem:[%s338_s0] sm:$0xf]  ;;  %v176_v19 = vshrl.u32 %v175_v18, 7 }
   0x7   :  { %126 = vmatpush1.bf16.msra.mxu0 %v229_v4  ;;  %v173_v21 = vld [vmem:[%s339_s2] sm:$0x3] }
   0x8   :  { %127 = vmatprep.subr.bf16.mxu0 %v230_v5  ;;  %v177_v20 = vsub.s32 0, %v176_v19  ;;  %v181_v22 = vsub.s32 1, %v176_v19  ;;  %v187_v23 = vld [vmem:[%s340_s3] sm:$0x3] }
   0xa   :  { %v178_v24 = vrot.slane %v173_v21, %v177_v20  ;;  %v182_v25 = vrot.slane %v173_v21, %v181_v22  ;;  %v192_v26 = vrot.slane %v187_v23, %v177_v20  ;;  %v196_v28 = vrot.slane %v187_v23, %v181_v22 }
   0xb   :  { %128 = vmatpush1.bf16.msra.mxu0 %v232_v6 }
   0xc   :  { %129 = vmatprep.subr.bf16.mxu0 %v233_v7 }
   0xf   :  { %130 = vmatpush1.bf16.msra.mxu0 %v235_v8 }
  0x10   :  { %131 = vmatprep.subr.bf16.mxu0 %v236_v9 }
  0x13   :  { %132 = vmatpush1.bf16.msra.mxu0 %v238_v10 }
  0x14   :  { %133 = vmatprep.subr.bf16.mxu0 %v239_v11 }
  0x17   :  { %134 = vmatpush1.bf16.msra.mxu0 %v241_v12 }
  0x18   :  { %135 = vmatprep.subr.bf16.mxu0 %v242_v13 }
  0x1b   :  { %136 = vmatpush1.bf16.msra.mxu0 %v244_v14 }
  0x1c   :  { %137 = vmatprep.subr.bf16.mxu0 %v245_v15 }
  0x1f   :  { %138 = vmatpush1.bf16.msra.mxu0 %v247_v16 }
  0x22   :  { %156 = vmatmul.mubr.bf16.vlgmr.msra.gmra.mrb[0].mxu0 %v26_v17 }
  0xf5   :  { %v157_v27 = vpop.f32.mrb[0].mxu0 }
  0xf6   :  { %v185_v29 = vmul.f32 %v178_v24, %v157_v27  ;;  %v159_v30 = vpop.f32.mrb[1].mxu0 }
  0xf7   :  { %v186_v31 = vmul.f32 %v182_v25, %v159_v30  ;;  %v161_v32 = vpop.f32.mrb[2].mxu0 }
  0xf8   :  { %v199_v33 = vadd.f32 %v192_v26, %v185_v29  ;;  %v162_v34 = vpop.f32.mrb[3].mxu0 }
  0xf9   :  { %v200_v35 = vadd.f32 %v196_v28, %v186_v31 }
  0xfa   :  { %201 = vst [vmem:[%s341_s4] sm:$0xff] %v199_v33 }
  0xfb   :  { %202 = vst [vmem:[%s341_s4 + $0x8] sm:$0xff] %v200_v35 }

// kernel: ae_forward.10
= control target key start
LH: loop header
LB: loop body
LE: loop exit
PB: predicated region body
PF: predicated region fallthrough
CT: control target
= control target key end

     0   :  { %s995_s18 = smov 0   ;;  %s997_s19 = smov 0   ;;  %s1064_s0 = inlined_call_operand.vmem [shape: bf16[4,64,128], index: 0, kind: input, shape index: {}]   ;;  %s1065_s1 = inlined_call_operand.vmem [shape: bf16[4,128,128], index: 1, kind: input, shape index: {}]   ;;  %s1066_s2 = inlined_call_operand.vmem [shape: f32[1,128], index: 2, kind: input, shape index: {}]   ;;  %s1067_s3 = inlined_call_operand.vmem [shape: f32[1,128], index: 3, kind: input, shape index: {}]   ;;  %s1068_s4 = inlined_call_operand.vmem [shape: f32[1,128], index: 4, kind: input, shape index: {}]   ;;  %s1069_s5 = inlined_call_operand.vmem [shape: f32[4,64,128], index: 5, kind: output, shape index: {}]  }
   0x1   :  { %s999_s20 = smov 0  }
   0x2 LB: > { %s41_s21 = sadd.s32 1, %s959_s19  ;;  %p826_p0 = scmp.ge.s32.totalorder %s963_s20, 1  ;;  %s963_s20 = sphi %s999_s20, %s15_s20   ;;  %s959_s19 = sphi %s997_s19, %s1071_s19   ;;  %s955_s18 = sphi %s995_s18, %s1070_s18  }
   0x3   : > { %p43_p1 = scmp.ge.s32.totalorder %s41_s21, 4  ;;  %p275_p2 = scmp.lt.s32.totalorder %s963_s20, 5 }
   0x5   : > { %s1073_s21 = smov (%p43_p1, %s41_s21), 0  ;;  %p276_p3 = pnand %p826_p0, %p275_p2 }
   0x6   : > { %p339_p4 = scmp.lt.s32.totalorder (!%p276_p3), %s955_s18, 3  ;;  %v845_v12 = vld [vmem:[%s1066_s2] ss:$0 sm:$0xff] (!%p276_p3) }
   0x7   : > { %279 = sbr.rel (%p276_p3) target bundleno = 274 (0x112), region = 40  ;;  %v846_v19 = vld [vmem:[%s1067_s3] ss:$0 sm:$0xff] (!%p276_p3) }
   0x8   : > { %v847_v30 = vld [vmem:[%s1068_s4] ss:$0 sm:$0xff] (!%p276_p3) }
   0xe   : > { %s1075_s18 = smov (!%p339_p4, %s955_s18), 3 }
   0xf   : > { %s851_s22 = sshll.u32 %s1075_s18, 6  ;;  %s850_s26 = sshll.u32 %s1075_s18, 5 }
  0x10   : > { %s1021_s25 = scalar_lea.vmem %s1065_s1, %s851_s22  ;;  %s1030_s29 = scalar_lea.vmem %s1064_s0, %s850_s26 }
  0x11   : > { %v929_v0 = vld [vmem:[%s1021_s25] sm:$0xff]   ;;  %v930_v1 = vld [vmem:[%s1021_s25 + $0x8] sm:$0xff]   ;;  %v931_v2 = vld [vmem:[%s1021_s25 + $0x10] sm:$0xff]   ;;  %s384_s13 = scalar_lea.vmem %s1069_s5, %s851_s22 }
  0x12   : > { %865 = vmatprep.subr.bf16.mxu0 %v929_v0  ;;  %889 = vmatprep.subr.bf16.mxu1 %v929_v0  ;;  %v932_v3 = vld [vmem:[%s1021_s25 + $0x18] sm:$0xff]   ;;  %v937_v4 = vld [vmem:[%s1030_s29] sm:$0xff]   ;;  %v938_v5 = vld [vmem:[%s1030_s29 + $0x10] sm:$0xff]  }
  0x13   : > { %866 = vmatpush3.bf16.msra.mxu0 %v929_v0  ;;  %897 = vmatpush3.bf16.msra.mxu1 %v929_v0  ;;  %v933_v6 = vld [vmem:[%s1021_s25 + $0x20] sm:$0xff]   ;;  %v934_v7 = vld [vmem:[%s1021_s25 + $0x28] sm:$0xff]   ;;  %v935_v8 = vld [vmem:[%s1021_s25 + $0x30] sm:$0xff]  }
  0x14   : > { %867 = vmatprep.subr.bf16.mxu0 %v930_v1  ;;  %890 = vmatprep.subr.bf16.mxu1 %v930_v1  ;;  %v936_v9 = vld [vmem:[%s1021_s25 + $0x38] sm:$0xff]   ;;  %v939_v10 = vld [vmem:[%s1030_s29 + $0x8] sm:$0xff]  }
  0x15   : > { %881 = vmatprep.mubr.bf16.mxu0 %v937_v4  ;;  %885 = vmatprep.mubr.bf16.mxu1 %v938_v5  ;;  %v940_v11 = vld [vmem:[%s1030_s29 + $0x18] sm:$0xff]  }
  0x17   : > { %868 = vmatpush3.bf16.msra.mxu0 %v930_v1  ;;  %898 = vmatpush3.bf16.msra.mxu1 %v930_v1 }
  0x18   : > { %869 = vmatprep.subr.bf16.mxu0 %v931_v2  ;;  %891 = vmatprep.subr.bf16.mxu1 %v931_v2 }
  0x1b   : > { %870 = vmatpush3.bf16.msra.mxu0 %v931_v2  ;;  %899 = vmatpush3.bf16.msra.mxu1 %v931_v2 }
  0x1c   : > { %871 = vmatprep.subr.bf16.mxu0 %v932_v3  ;;  %892 = vmatprep.subr.bf16.mxu1 %v932_v3 }
  0x1f   : > { %872 = vmatpush3.bf16.msra.mxu0 %v932_v3  ;;  %900 = vmatpush3.bf16.msra.mxu1 %v932_v3 }
  0x20   : > { %873 = vmatprep.subr.bf16.mxu0 %v933_v6  ;;  %893 = vmatprep.subr.bf16.mxu1 %v933_v6 }
  0x23   : > { %874 = vmatpush3.bf16.msra.mxu0 %v933_v6  ;;  %901 = vmatpush3.bf16.msra.mxu1 %v933_v6 }
  0x24   : > { %875 = vmatprep.subr.bf16.mxu0 %v934_v7  ;;  %894 = vmatprep.subr.bf16.mxu1 %v934_v7 }
  0x27   : > { %876 = vmatpush3.bf16.msra.mxu0 %v934_v7  ;;  %902 = vmatpush3.bf16.msra.mxu1 %v934_v7 }
  0x28   : > { %877 = vmatprep.subr.bf16.mxu0 %v935_v8  ;;  %895 = vmatprep.subr.bf16.mxu1 %v935_v8 }
  0x2b   : > { %878 = vmatpush3.bf16.msra.mxu0 %v935_v8  ;;  %903 = vmatpush3.bf16.msra.mxu1 %v935_v8 }
  0x2c   : > { %879 = vmatprep.subr.bf16.mxu0 %v936_v9  ;;  %896 = vmatprep.subr.bf16.mxu1 %v936_v9 }
  0x2f   : > { %880 = vmatpush3.bf16.msra.mxu0 %v936_v9  ;;  %904 = vmatpush3.bf16.msra.mxu1 %v936_v9 }
  0x32   : > { %882 = vmatmul.mubr.bf16.vlgmr.msra.gmra.mrb[0].mxu0 %v939_v10  ;;  %886 = vmatmul.mubr.bf16.vlgmr.msra.gmra.mrb[0].mxu1 %v940_v11 }
 0x105   : > { %v883_v13 = vpop.f32.mrb[0].mxu0  ;;  %v887_v14 = vpop.f32.mrb[0].mxu1 }
 0x106   : > { %v604_v15 = vadd.f32 %v883_v13, %v845_v12  ;;  %v608_v16 = vadd.f32 %v887_v14, %v845_v12  ;;  %v537_v17 = vpop.f32.mrb[1].mxu0  ;;  %v553_v18 = vpop.f32.mrb[1].mxu1 }
 0x107   : > { %v602_v20 = vadd.f32 %v845_v12, %v537_v17  ;;  %v606_v21 = vadd.f32 %v845_v12, %v553_v18  ;;  %v884_v22 = vpop.f32.mrb[2].mxu0  ;;  %v888_v23 = vpop.f32.mrb[2].mxu1 }
 0x108   : > { %v612_v24 = vmax.f32 %v604_v15, 0.0  ;;  %v616_v25 = vmax.f32 %v608_v16, 0.0  ;;  %v605_v26 = vadd.f32 %v884_v22, %v845_v12  ;;  %v609_v27 = vadd.f32 %v888_v23, %v845_v12  ;;  %v540_v28 = vpop.f32.mrb[3].mxu0  ;;  %v556_v29 = vpop.f32.mrb[3].mxu1 }
 0x109   : > { %v610_v31 = vmax.f32 %v602_v20, 0.0  ;;  %v614_v32 = vmax.f32 %v606_v21, 0.0  ;;  %v603_v33 = vadd.f32 %v845_v12, %v540_v28  ;;  %v607_v34 = vadd.f32 %v845_v12, %v556_v29 }
 0x10a   : > { %v627_v35 = vmul.f32 %v846_v19, %v612_v24  ;;  %v631_v36 = vmul.f32 %v846_v19, %v616_v25  ;;  %v613_v37 = vmax.f32 %v605_v26, 0.0  ;;  %v617_v38 = vmax.f32 %v609_v27, 0.0 }
 0x10b   : > { %v625_v39 = vmul.f32 %v846_v19, %v610_v31  ;;  %v629_v40 = vmul.f32 %v846_v19, %v614_v32  ;;  %v611_v41 = vmax.f32 %v603_v33, 0.0  ;;  %v615_v42 = vmax.f32 %v607_v34, 0.0 }
 0x10c   : > { %v642_v43 = vadd.f32 %v847_v30, %v627_v35  ;;  %v646_v44 = vadd.f32 %v847_v30, %v631_v36  ;;  %v628_v45 = vmul.f32 %v846_v19, %v613_v37  ;;  %v632_v46 = vmul.f32 %v846_v19, %v617_v38 }
 0x10d   : > { %v640_v47 = vadd.f32 %v847_v30, %v625_v39  ;;  %v644_v48 = vadd.f32 %v847_v30, %v629_v40  ;;  %v626_v49 = vmul.f32 %v846_v19, %v611_v41  ;;  %v630_v50 = vmul.f32 %v846_v19, %v615_v42 }
 0x10e   : > { %650 = vst [vmem:[%s384_s13 + $0x10] sm:$0xff] %v642_v43  ;;  %654 = vst [vmem:[%s384_s13 + $0x30] sm:$0xff] %v646_v44  ;;  %v643_v51 = vadd.f32 %v847_v30, %v628_v45  ;;  %v647_v52 = vadd.f32 %v847_v30, %v632_v46 }
 0x10f   : > { %648 = vst [vmem:[%s384_s13] sm:$0xff] %v640_v47  ;;  %652 = vst [vmem:[%s384_s13 + $0x20] sm:$0xff] %v644_v48  ;;  %v641_v53 = vadd.f32 %v847_v30, %v626_v49  ;;  %v645_v54 = vadd.f32 %v847_v30, %v630_v50 }
 0x110   : > { %651 = vst [vmem:[%s384_s13 + $0x18] sm:$0xff] %v643_v51  ;;  %655 = vst [vmem:[%s384_s13 + $0x38] sm:$0xff] %v647_v52 }
 0x111   : > { %649 = vst [vmem:[%s384_s13 + $0x8] sm:$0xff] %v641_v53  ;;  %653 = vst [vmem:[%s384_s13 + $0x28] sm:$0xff] %v645_v54 }
 0x112 PF: > { %s15_s20 = sadd.s32 1, %s963_s20   ;;  %s1070_s18 = smov %s959_s19 }
 0x113   : > { %p12_p5 = scmp.ge.s32.totalorder %s15_s20, 6   ;;  %s1071_s19 = smov %s1073_s21 }
 0x115   :  { %14 = sbr.rel (!%p12_p5) target bundleno = 2 (0x2), region = 90 }

// kernel: ae_forward.11
= control target key start
LH: loop header
LB: loop body
LE: loop exit
PB: predicated region body
PF: predicated region fallthrough
CT: control target
= control target key end

     0   :  { %s1807_s18 = smov 0   ;;  %s1809_s19 = smov 0   ;;  %s2045_s0 = inlined_call_operand.vmem [shape: bf16[4,256,128], index: 0, kind: input, shape index: {}]   ;;  %s2046_s1 = inlined_call_operand.vmem [shape: bf16[4,128,128], index: 1, kind: input, shape index: {}]   ;;  %s2047_s2 = inlined_call_operand.vmem [shape: f32[1,128], index: 2, kind: input, shape index: {}]   ;;  %s2048_s3 = inlined_call_operand.vmem [shape: f32[1,128], index: 3, kind: input, shape index: {}]   ;;  %s2049_s4 = inlined_call_operand.vmem [shape: f32[1,128], index: 4, kind: input, shape index: {}]   ;;  %s2050_s5 = inlined_call_operand.vmem [shape: f32[4,256,128], index: 5, kind: output, shape index: {}]  }
   0x1   :  { %s1811_s20 = smov 0  }
   0x2 LB: > { %s41_s21 = sadd.s32 1, %s1771_s19  ;;  %p1418_p0 = scmp.ge.s32.totalorder %s1775_s20, 1  ;;  %s1775_s20 = sphi %s1811_s20, %s15_s20   ;;  %s1771_s19 = sphi %s1809_s19, %s2052_s19   ;;  %s1767_s18 = sphi %s1807_s18, %s2051_s18  }
   0x3   : > { %p43_p1 = scmp.ge.s32.totalorder %s41_s21, 4  ;;  %p275_p2 = scmp.lt.s32.totalorder %s1775_s20, 5 }
   0x5   : > { %s2054_s21 = smov (%p43_p1, %s41_s21), 0  ;;  %p276_p3 = pnand %p1418_p0, %p275_p2 }
   0x6   : > { %p339_p4 = scmp.lt.s32.totalorder (!%p276_p3), %s1767_s18, 3  ;;  %v1866_v24 = vld [vmem:[%s2047_s2] ss:$0 sm:$0xff] (!%p276_p3) }
   0x7   : > { %279 = sbr.rel (%p276_p3) target bundleno = 354 (0x162), region = 40 }
   0xe   : > { %s2056_s18 = smov (!%p339_p4, %s1767_s18), 3 }
   0xf   : > { %s1487_s22 = sshll.u32 %s2056_s18, 6  ;;  %s1486_s26 = sshll.u32 %s2056_s18, 7 }
  0x10   : > { %s1831_s25 = scalar_lea.vmem %s2046_s1, %s1487_s22  ;;  %s1840_s29 = scalar_lea.vmem %s2045_s0, %s1486_s26 }
  0x11   : > { %v1601_v0 = vld [vmem:[%s1831_s25] sm:$0xff]   ;;  %v1602_v1 = vld [vmem:[%s1831_s25 + $0x8] sm:$0xff]   ;;  %v1603_v2 = vld [vmem:[%s1831_s25 + $0x10] sm:$0xff]   ;;  %s1488_s9 = sshll.u32 %s2056_s18, 8 }
  0x12   : > { %1513 = vmatprep.subr.bf16.mxu0 %v1601_v0  ;;  %1561 = vmatprep.subr.bf16.mxu1 %v1601_v0  ;;  %v1604_v3 = vld [vmem:[%s1831_s25 + $0x18] sm:$0xff]   ;;  %v1609_v4 = vld [vmem:[%s1840_s29] sm:$0xff]   ;;  %v1606_v7 = vld [vmem:[%s1831_s25 + $0x28] sm:$0xff]   ;;  %s1921_s14 = scalar_lea.vmem %s2050_s5, %s1488_s9 }
  0x13   : > { %1514 = vmatpush3.bf16.msra.mxu0 %v1601_v0  ;;  %1569 = vmatpush3.bf16.msra.mxu1 %v1601_v0  ;;  %v1610_v5 = vld [vmem:[%s1840_s29 + $0x40] sm:$0xff]   ;;  %v1607_v8 = vld [vmem:[%s1831_s25 + $0x30] sm:$0xff]   ;;  %v1608_v9 = vld [vmem:[%s1831_s25 + $0x38] sm:$0xff]  }
  0x14   : > { %1515 = vmatprep.subr.bf16.mxu0 %v1602_v1  ;;  %1562 = vmatprep.subr.bf16.mxu1 %v1602_v1  ;;  %v1605_v6 = vld [vmem:[%s1831_s25 + $0x20] sm:$0xff]   ;;  %v1611_v10 = vld [vmem:[%s1840_s29 + $0x8] sm:$0xff]   ;;  %v1613_v12 = vld [vmem:[%s1840_s29 + $0x10] sm:$0xff]  }
  0x15   : > { %1529 = vmatprep.mubr.bf16.mxu0 %v1609_v4  ;;  %1545 = vmatprep.mubr.bf16.mxu1 %v1610_v5  ;;  %v1612_v11 = vld [vmem:[%s1840_s29 + $0x48] sm:$0xff]   ;;  %v1614_v13 = vld [vmem:[%s1840_s29 + $0x50] sm:$0xff]   ;;  %v1615_v14 = vld [vmem:[%s1840_s29 + $0x18] sm:$0xff]  }
  0x16   : > { %v1616_v15 = vld [vmem:[%s1840_s29 + $0x58] sm:$0xff]   ;;  %v1617_v16 = vld [vmem:[%s1840_s29 + $0x20] sm:$0xff]   ;;  %v1619_v18 = vld [vmem:[%s1840_s29 + $0x28] sm:$0xff]  }
  0x17   : > { %1516 = vmatpush3.bf16.msra.mxu0 %v1602_v1  ;;  %1570 = vmatpush3.bf16.msra.mxu1 %v1602_v1  ;;  %v1618_v17 = vld [vmem:[%s1840_s29 + $0x60] sm:$0xff]   ;;  %v1620_v19 = vld [vmem:[%s1840_s29 + $0x68] sm:$0xff]   ;;  %v1621_v20 = vld [vmem:[%s1840_s29 + $0x30] sm:$0xff]  }
  0x18   : > { %1517 = vmatprep.subr.bf16.mxu0 %v1603_v2  ;;  %1563 = vmatprep.subr.bf16.mxu1 %v1603_v2  ;;  %v1622_v21 = vld [vmem:[%s1840_s29 + $0x70] sm:$0xff]   ;;  %v1623_v22 = vld [vmem:[%s1840_s29 + $0x38] sm:$0xff]  }
  0x19   : > { %v1624_v23 = vld [vmem:[%s1840_s29 + $0x78] sm:$0xff]  }
  0x1b   : > { %1518 = vmatpush3.bf16.msra.mxu0 %v1603_v2  ;;  %1571 = vmatpush3.bf16.msra.mxu1 %v1603_v2 }
  0x1c   : > { %1519 = vmatprep.subr.bf16.mxu0 %v1604_v3  ;;  %1564 = vmatprep.subr.bf16.mxu1 %v1604_v3 }
  0x1f   : > { %1520 = vmatpush3.bf16.msra.mxu0 %v1604_v3  ;;  %1572 = vmatpush3.bf16.msra.mxu1 %v1604_v3 }
  0x20   : > { %1521 = vmatprep.subr.bf16.mxu0 %v1605_v6  ;;  %1565 = vmatprep.subr.bf16.mxu1 %v1605_v6 }
  0x23   : > { %1522 = vmatpush3.bf16.msra.mxu0 %v1605_v6  ;;  %1573 = vmatpush3.bf16.msra.mxu1 %v1605_v6 }
  0x24   : > { %1523 = vmatprep.subr.bf16.mxu0 %v1606_v7  ;;  %1566 = vmatprep.subr.bf16.mxu1 %v1606_v7 }
  0x27   : > { %1524 = vmatpush3.bf16.msra.mxu0 %v1606_v7  ;;  %1574 = vmatpush3.bf16.msra.mxu1 %v1606_v7 }
  0x28   : > { %1525 = vmatprep.subr.bf16.mxu0 %v1607_v8  ;;  %1567 = vmatprep.subr.bf16.mxu1 %v1607_v8 }
  0x2b   : > { %1526 = vmatpush3.bf16.msra.mxu0 %v1607_v8  ;;  %1575 = vmatpush3.bf16.msra.mxu1 %v1607_v8 }
  0x2c   : > { %1527 = vmatprep.subr.bf16.mxu0 %v1608_v9  ;;  %1568 = vmatprep.subr.bf16.mxu1 %v1608_v9 }
  0x2f   : > { %1528 = vmatpush3.bf16.msra.mxu0 %v1608_v9  ;;  %1576 = vmatpush3.bf16.msra.mxu1 %v1608_v9 }
  0x32   : > { %1530 = vmatmul.mubr.bf16.vlgmr.msra.gmra.mrb[0].mxu0 %v1611_v10  ;;  %1546 = vmatmul.mubr.bf16.vlgmr.msra.gmra.mrb[0].mxu1 %v1612_v11 }
  0x33   : > { %1533 = vmatprep.mubr.bf16.mxu0 %v1613_v12  ;;  %1549 = vmatprep.mubr.bf16.mxu1 %v1614_v13 }
  0x3a   : > { %1534 = vmatmul.mubr.bf16.gmra.mrb[4].mxu0 %v1615_v14  ;;  %1550 = vmatmul.mubr.bf16.gmra.mrb[4].mxu1 %v1616_v15 }
  0x3b   : > { %1537 = vmatprep.mubr.bf16.mxu0 %v1617_v16  ;;  %1553 = vmatprep.mubr.bf16.mxu1 %v1618_v17 }
  0x42   : > { %1538 = vmatmul.mubr.bf16.gmra.mrb[8].mxu0 %v1619_v18  ;;  %1554 = vmatmul.mubr.bf16.gmra.mrb[8].mxu1 %v1620_v19 }
  0x43   : > { %1541 = vmatprep.mubr.bf16.mxu0 %v1621_v20  ;;  %1557 = vmatprep.mubr.bf16.mxu1 %v1622_v21 }
  0x4a   : > { %1542 = vmatmul.mubr.bf16.gmra.mrb[12].mxu0 %v1623_v22  ;;  %1558 = vmatmul.mubr.bf16.gmra.mrb[12].mxu1 %v1624_v23 }
 0x105   : > { %v1531_v25 = vpop.f32.mrb[0].mxu0  ;;  %v1547_v26 = vpop.f32.mrb[0].mxu1 }
 0x106   : > { %v916_v27 = vadd.f32 %v1531_v25, %v1866_v24  ;;  %v932_v28 = vadd.f32 %v1547_v26, %v1866_v24  ;;  %v681_v29 = vpop.f32.mrb[1].mxu0  ;;  %v745_v30 = vpop.f32.mrb[1].mxu1 }
 0x107   : > { %v914_v31 = vadd.f32 %v1866_v24, %v681_v29  ;;  %v930_v32 = vadd.f32 %v1866_v24, %v745_v30  ;;  %v1532_v33 = vpop.f32.mrb[2].mxu0  ;;  %v1548_v34 = vpop.f32.mrb[2].mxu1 }
 0x108   : > { %v1452_v35 = vmul.f32 -1.442695, %v916_v27  ;;  %v1468_v36 = vmul.f32 -1.442695, %v932_v28  ;;  %v917_v37 = vadd.f32 %v1532_v33, %v1866_v24  ;;  %v933_v38 = vadd.f32 %v1548_v34, %v1866_v24  ;;  %v684_v39 = vpop.f32.mrb[3].mxu0  ;;  %v748_v40 = vpop.f32.mrb[3].mxu1 }
 0x109   : > { %v1450_v41 = vmul.f32 -1.442695, %v914_v31  ;;  %v1466_v42 = vmul.f32 -1.442695, %v930_v32  ;;  %v915_v43 = vadd.f32 %v1866_v24, %v684_v39  ;;  %v931_v44 = vadd.f32 %v1866_v24, %v748_v40  ;;  %v1892_v34 = vld [vmem:[%s2048_s3] ss:$0 sm:$0xff] }
 0x10a   : > { %1625 = vpow2.f32 %v1452_v35  ;;  %v1453_v45 = vmul.f32 -1.442695, %v917_v37  ;;  %v1469_v46 = vmul.f32 -1.442695, %v933_v38 }
 0x10b   : > { %1627 = vpow2.f32 %v1468_v36  ;;  %v1451_v47 = vmul.f32 -1.442695, %v915_v43  ;;  %v1467_v48 = vmul.f32 -1.442695, %v931_v44 }
 0x10c   : > { %1629 = vpow2.f32 %v1450_v41 }
 0x10d   : > { %1631 = vpow2.f32 %v1466_v42  ;;  %v1535_v49 = vpop.f32.mrb[4].mxu0  ;;  %v1551_v50 = vpop.f32.mrb[4].mxu1 }
 0x10e   : > { %1633 = vpow2.f32 %v1453_v45  ;;  %v920_v51 = vadd.f32 %v1535_v49, %v1866_v24  ;;  %v936_v52 = vadd.f32 %v1551_v50, %v1866_v24  ;;  %v697_v53 = vpop.f32.mrb[5].mxu0  ;;  %v761_v54 = vpop.f32.mrb[5].mxu1 }
 0x10f   : > { %1635 = vpow2.f32 %v1469_v46  ;;  %v918_v55 = vadd.f32 %v1866_v24, %v697_v53  ;;  %v934_v56 = vadd.f32 %v1866_v24, %v761_v54  ;;  %v1536_v57 = vpop.f32.mrb[6].mxu0  ;;  %v1552_v58 = vpop.f32.mrb[6].mxu1 }
 0x110   : > { %1637 = vpow2.f32 %v1451_v47  ;;  %v1456_v59 = vmul.f32 -1.442695, %v920_v51  ;;  %v1472_v60 = vmul.f32 -1.442695, %v936_v52  ;;  %v921_v61 = vadd.f32 %v1536_v57, %v1866_v24  ;;  %v700_v62 = vpop.f32.mrb[7].mxu0  ;;  %v764_v63 = vpop.f32.mrb[7].mxu1 }
 0x111   : > { %1639 = vpow2.f32 %v1467_v48  ;;  %v1454_v0 = vmul.f32 -1.442695, %v918_v55  ;;  %v1470_v1 = vmul.f32 -1.442695, %v934_v56  ;;  %v937_v21 = vadd.f32 %v1552_v58, %v1866_v24  ;;  %v1911_v57 = vld [vmem:[%s2049_s4] ss:$0 sm:$0xff] }
 0x112   : > { %1641 = vpow2.f32 %v1456_v59  ;;  %v1457_v2 = vmul.f32 -1.442695, %v921_v61  ;;  %v919_v26 = vadd.f32 %v1866_v24, %v700_v62  ;;  %v935_v29 = vadd.f32 %v1866_v24, %v764_v63 }
 0x113   : > { %1643 = vpow2.f32 %v1472_v60  ;;  %v1473_v36 = vmul.f32 -1.442695, %v937_v21 }
 0x114   : > { %v1626_v3 = vpop.eup %1625  ;;  %1645 = vpow2.f32 %v1454_v0  ;;  %v1455_v41 = vmul.f32 -1.442695, %v919_v26  ;;  %v1471_v47 = vmul.f32 -1.442695, %v935_v29 }
 0x115   : > { %v1628_v4 = vpop.eup %1627  ;;  %v1044_v5 = vadd.f32 1.0, %v1626_v3  ;;  %1647 = vpow2.f32 %v1470_v1  ;;  %v1539_v6 = vpop.f32.mrb[8].mxu0 }
 0x116   : > { %v1555_v7 = vpop.f32.mrb[8].mxu1  ;;  %v1630_v8 = vpop.eup %1629  ;;  %v1060_v9 = vadd.f32 1.0, %v1628_v4  ;;  %1649 = vpow2.f32 %v1457_v2  ;;  %v924_v32 = vadd.f32 %v1539_v6, %v1866_v24 }
 0x117   : > { %v713_v10 = vpop.f32.mrb[9].mxu0  ;;  %v777_v11 = vpop.f32.mrb[9].mxu1  ;;  %1651 = vrcp.f32 %v1044_v5  ;;  %v1042_v13 = vadd.f32 1.0, %v1630_v8  ;;  %v940_v37 = vadd.f32 %v1555_v7, %v1866_v24 }
 0x118   : > { %v1632_v12 = vpop.eup %1631  ;;  %v1540_v14 = vpop.f32.mrb[10].mxu0  ;;  %1653 = vrcp.f32 %v1060_v9  ;;  %v922_v42 = vadd.f32 %v1866_v24, %v713_v10  ;;  %v938_v48 = vadd.f32 %v1866_v24, %v777_v11  ;;  %v1460_v53 = vmul.f32 -1.442695, %v924_v32 }
 0x119   : > { %v1556_v15 = vpop.f32.mrb[10].mxu1  ;;  %v1634_v16 = vpop.eup %1633  ;;  %v1058_v17 = vadd.f32 1.0, %v1632_v12  ;;  %1655 = vrcp.f32 %v1042_v13  ;;  %v1476_v59 = vmul.f32 -1.442695, %v940_v37  ;;  %v925_v60 = vadd.f32 %v1540_v14, %v1866_v24 }
 0x11a   : > { %v1881_v18 = vpop.f32.mrb[11].mxu0  ;;  %v1636_v19 = vpop.eup %1635  ;;  %v1045_v20 = vadd.f32 1.0, %v1634_v16  ;;  %v1458_v0 = vmul.f32 -1.442695, %v922_v42  ;;  %v941_v1 = vadd.f32 %v1556_v15, %v1866_v24  ;;  %v1474_v4 = vmul.f32 -1.442695, %v938_v48 }
 0x11b   : > { %v1884_v22 = vpop.f32.mrb[11].mxu1  ;;  %v1638_v23 = vpop.eup %1637  ;;  %1657 = vrcp.f32 %v1058_v17  ;;  %v1061_v25 = vadd.f32 1.0, %v1636_v19  ;;  %v923_v5 = vadd.f32 %v1866_v24, %v1881_v18  ;;  %v1461_v13 = vmul.f32 -1.442695, %v925_v60 }
 0x11c   : > { %v1640_v27 = vpop.eup %1639  ;;  %1659 = vrcp.f32 %v1045_v20  ;;  %v1043_v28 = vadd.f32 1.0, %v1638_v23  ;;  %v939_v9 = vadd.f32 %v1866_v24, %v1884_v22  ;;  %v1477_v17 = vmul.f32 -1.442695, %v941_v1 }
 0x11d   : > { %v1642_v30 = vpop.eup %1641  ;;  %1661 = vrcp.f32 %v1061_v25  ;;  %v1059_v31 = vadd.f32 1.0, %v1640_v27  ;;  %v1543_v38 = vpop.f32.mrb[12].mxu0 }
 0x11e   : > { %v1644_v33 = vpop.eup %1643  ;;  %1663 = vrcp.f32 %v1043_v28  ;;  %v1048_v35 = vadd.f32 1.0, %v1642_v30  ;;  %v1559_v43 = vpop.f32.mrb[12].mxu1  ;;  %v928_v21 = vadd.f32 %v1543_v38, %v1866_v24  ;;  %v1459_v30 = vmul.f32 -1.442695, %v923_v5 }
 0x11f   : > { %v1646_v39 = vpop.eup %1645  ;;  %1665 = vrcp.f32 %v1059_v31  ;;  %v1064_v40 = vadd.f32 1.0, %v1644_v33  ;;  %v1896_v44 = vpop.f32.mrb[13].mxu0  ;;  %v944_v26 = vadd.f32 %v1559_v43, %v1866_v24 }
 0x120   : > { %v1648_v45 = vpop.eup %1647  ;;  %1667 = vrcp.f32 %v1048_v35  ;;  %v1046_v46 = vadd.f32 1.0, %v1646_v39  ;;  %v1899_v49 = vpop.f32.mrb[13].mxu1  ;;  %v1475_v35 = vmul.f32 -1.442695, %v939_v9  ;;  %v1464_v39 = vmul.f32 -1.442695, %v928_v21 }
 0x121   : > { %v1901_v50 = vpop.f32.mrb[14].mxu0  ;;  %v1650_v51 = vpop.eup %1649  ;;  %1669 = vrcp.f32 %v1064_v40  ;;  %v1062_v52 = vadd.f32 1.0, %v1648_v45  ;;  %v1480_v43 = vmul.f32 -1.442695, %v944_v26 }
 0x122   : > { %v1904_v54 = vpop.f32.mrb[14].mxu1  ;;  %v1906_v55 = vpop.f32.mrb[15].mxu0  ;;  %1671 = vrcp.f32 %v1046_v46  ;;  %v1049_v58 = vadd.f32 1.0, %v1650_v51 }
 0x123   : > { %v1652_v56 = vpop.eup %1651  ;;  %v1914_v61 = vpop.f32.mrb[15].mxu1  ;;  %1673 = vrcp.f32 %v1062_v52 }
 0x124   : > { %v1654_v62 = vpop.eup %1653  ;;  %v1147_v63 = vmul.f32 %v1652_v56, %v1892_v34  ;;  %1675 = vrcp.f32 %v1049_v58 }
 0x125   : > { %v1656_v2 = vpop.eup %1655  ;;  %v1163_v3 = vmul.f32 %v1654_v62, %v1892_v34  ;;  %1677 = vpow2.f32 %v1473_v36 }
 0x126   : > { %v1658_v6 = vpop.eup %1657  ;;  %v1186_v7 = vadd.f32 %v1911_v57, %v1147_v63  ;;  %v1145_v8 = vmul.f32 %v1656_v2, %v1892_v34  ;;  %1679 = vpow2.f32 %v1455_v41 }
 0x127   : > { %v1660_v10 = vpop.eup %1659  ;;  %v1202_v11 = vadd.f32 %v1911_v57, %v1163_v3  ;;  %v1161_v12 = vmul.f32 %v1658_v6, %v1892_v34  ;;  %1681 = vpow2.f32 %v1471_v47 }
 0x128   : > { %v1662_v14 = vpop.eup %1661  ;;  %1218 = vst [vmem:[%s1921_s14 + $0x10] sm:$0xff] %v1186_v7  ;;  %v1184_v15 = vadd.f32 %v1911_v57, %v1145_v8  ;;  %v1148_v16 = vmul.f32 %v1660_v10, %v1892_v34  ;;  %1683 = vpow2.f32 %v1460_v53 }
 0x129   : > { %v1664_v18 = vpop.eup %1663  ;;  %1234 = vst [vmem:[%s1921_s14 + $0x90] sm:$0xff] %v1202_v11  ;;  %v1200_v19 = vadd.f32 %v1911_v57, %v1161_v12  ;;  %v1164_v20 = vmul.f32 %v1662_v14, %v1892_v34  ;;  %1685 = vpow2.f32 %v1476_v59  ;;  %v926_v11 = vadd.f32 %v1866_v24, %v1896_v44 }
 0x12a   : > { %v1666_v22 = vpop.eup %1665  ;;  %1216 = vst [vmem:[%s1921_s14] sm:$0xff] %v1184_v15  ;;  %v1187_v23 = vadd.f32 %v1911_v57, %v1148_v16  ;;  %v1146_v25 = vmul.f32 %v1664_v18, %v1892_v34  ;;  %1687 = vpow2.f32 %v1458_v0  ;;  %v942_v14 = vadd.f32 %v1866_v24, %v1899_v49 }
 0x12b   : > { %v1668_v27 = vpop.eup %1667  ;;  %1232 = vst [vmem:[%s1921_s14 + $0x80] sm:$0xff] %v1200_v19  ;;  %v1203_v28 = vadd.f32 %v1911_v57, %v1164_v20  ;;  %v1162_v29 = vmul.f32 %v1666_v22, %v1892_v34  ;;  %1689 = vpow2.f32 %v1474_v4  ;;  %v945_v20 = vadd.f32 %v1904_v54, %v1866_v24 }
 0x12c   : > { %v1670_v31 = vpop.eup %1669  ;;  %1219 = vst [vmem:[%s1921_s14 + $0x18] sm:$0xff] %v1187_v23  ;;  %v1185_v32 = vadd.f32 %v1911_v57, %v1146_v25  ;;  %v1151_v33 = vmul.f32 %v1668_v27, %v1892_v34  ;;  %1691 = vpow2.f32 %v1461_v13  ;;  %v1462_v22 = vmul.f32 -1.442695, %v926_v11 }
 0x12d   : > { %v1672_v36 = vpop.eup %1671  ;;  %1235 = vst [vmem:[%s1921_s14 + $0x98] sm:$0xff] %v1203_v28  ;;  %v1201_v37 = vadd.f32 %v1911_v57, %v1162_v29  ;;  %v1167_v38 = vmul.f32 %v1670_v31, %v1892_v34  ;;  %1693 = vpow2.f32 %v1477_v17  ;;  %v929_v17 = vadd.f32 %v1901_v50, %v1866_v24 }
 0x12e   : > { %v1674_v40 = vpop.eup %1673  ;;  %1217 = vst [vmem:[%s1921_s14 + $0x8] sm:$0xff] %v1185_v32  ;;  %v1190_v41 = vadd.f32 %v1911_v57, %v1151_v33  ;;  %v1149_v42 = vmul.f32 %v1672_v36, %v1892_v34  ;;  %1695 = vpow2.f32 %v1459_v30  ;;  %v927_v23 = vadd.f32 %v1866_v24, %v1906_v55 }
 0x12f   : > { %v1676_v45 = vpop.eup %1675  ;;  %1233 = vst [vmem:[%s1921_s14 + $0x88] sm:$0xff] %v1201_v37  ;;  %v1206_v46 = vadd.f32 %v1911_v57, %v1167_v38  ;;  %v1165_v47 = vmul.f32 %v1674_v40, %v1892_v34  ;;  %1697 = vpow2.f32 %v1475_v35  ;;  %v1478_v26 = vmul.f32 -1.442695, %v942_v14 }
 0x130   : > { %v1678_v48 = vpop.eup %1677  ;;  %1222 = vst [vmem:[%s1921_s14 + $0x30] sm:$0xff] %v1190_v41  ;;  %v1188_v51 = vadd.f32 %v1911_v57, %v1149_v42  ;;  %v1152_v52 = vmul.f32 %v1676_v45, %v1892_v34  ;;  %1699 = vpow2.f32 %v1464_v39  ;;  %v943_v50 = vadd.f32 %v1866_v24, %v1914_v61 }
 0x131   : > { %v1680_v53 = vpop.eup %1679  ;;  %1238 = vst [vmem:[%s1921_s14 + $0xb0] sm:$0xff] %v1206_v46  ;;  %v1204_v56 = vadd.f32 %v1911_v57, %v1165_v47  ;;  %v1065_v58 = vadd.f32 1.0, %v1678_v48  ;;  %1701 = vpow2.f32 %v1480_v43  ;;  %v1465_v29 = vmul.f32 -1.442695, %v929_v17 }
 0x132   : > { %v1682_v59 = vpop.eup %1681  ;;  %1220 = vst [vmem:[%s1921_s14 + $0x20] sm:$0xff] %v1188_v51  ;;  %v1191_v60 = vadd.f32 %v1911_v57, %v1152_v52  ;;  %v1047_v62 = vadd.f32 1.0, %v1680_v53  ;;  %v1481_v31 = vmul.f32 -1.442695, %v945_v20  ;;  %v1463_v35 = vmul.f32 -1.442695, %v927_v23 }
 0x133   : > { %v1684_v63 = vpop.eup %1683  ;;  %1236 = vst [vmem:[%s1921_s14 + $0xa0] sm:$0xff] %v1204_v56  ;;  %1703 = vrcp.f32 %v1065_v58  ;;  %v1063_v0 = vadd.f32 1.0, %v1682_v59  ;;  %v1479_v37 = vmul.f32 -1.442695, %v943_v50 }
 0x134   : > { %v1686_v1 = vpop.eup %1685  ;;  %1223 = vst [vmem:[%s1921_s14 + $0x38] sm:$0xff] %v1191_v60  ;;  %1705 = vrcp.f32 %v1047_v62  ;;  %v1052_v2 = vadd.f32 1.0, %v1684_v63 }
 0x135   : > { %v1688_v3 = vpop.eup %1687  ;;  %1707 = vrcp.f32 %v1063_v0  ;;  %v1068_v4 = vadd.f32 1.0, %v1686_v1 }
 0x136   : > { %v1690_v5 = vpop.eup %1689  ;;  %1709 = vrcp.f32 %v1052_v2  ;;  %v1050_v6 = vadd.f32 1.0, %v1688_v3 }
 0x137   : > { %v1692_v7 = vpop.eup %1691  ;;  %1711 = vrcp.f32 %v1068_v4  ;;  %v1066_v8 = vadd.f32 1.0, %v1690_v5 }
 0x138   : > { %v1694_v9 = vpop.eup %1693  ;;  %1713 = vrcp.f32 %v1050_v6  ;;  %v1053_v10 = vadd.f32 1.0, %v1692_v7 }
 0x139   : > { %v1696_v12 = vpop.eup %1695  ;;  %1715 = vrcp.f32 %v1066_v8  ;;  %v1069_v13 = vadd.f32 1.0, %v1694_v9 }
 0x13a   : > { %v1698_v15 = vpop.eup %1697  ;;  %1717 = vrcp.f32 %v1053_v10  ;;  %v1051_v16 = vadd.f32 1.0, %v1696_v12 }
 0x13b   : > { %v1700_v18 = vpop.eup %1699  ;;  %1719 = vrcp.f32 %v1069_v13  ;;  %v1067_v19 = vadd.f32 1.0, %v1698_v15 }
 0x13c   : > { %v1702_v21 = vpop.eup %1701  ;;  %1721 = vrcp.f32 %v1051_v16  ;;  %v1056_v44 = vadd.f32 1.0, %v1700_v18 }
 0x13d   : > { %v1704_v49 = vpop.eup %1703  ;;  %1723 = vrcp.f32 %v1067_v19  ;;  %v1072_v25 = vadd.f32 1.0, %v1702_v21 }
 0x13e   : > { %v1706_v27 = vpop.eup %1705  ;;  %v1168_v28 = vmul.f32 %v1704_v49, %v1892_v34  ;;  %1725 = vrcp.f32 %v1056_v44 }
 0x13f   : > { %v1708_v54 = vpop.eup %1707  ;;  %v1150_v30 = vmul.f32 %v1706_v27, %v1892_v34  ;;  %1727 = vrcp.f32 %v1072_v25 }
 0x140   : > { %v1710_v32 = vpop.eup %1709  ;;  %v1207_v55 = vadd.f32 %v1911_v57, %v1168_v28  ;;  %v1166_v33 = vmul.f32 %v1708_v54, %v1892_v34  ;;  %1729 = vpow2.f32 %v1462_v22 }
 0x141   : > { %v1712_v24 = vpop.eup %1711  ;;  %v1189_v61 = vadd.f32 %v1911_v57, %v1150_v30  ;;  %v1155_v36 = vmul.f32 %v1710_v32, %v1892_v34  ;;  %1731 = vpow2.f32 %v1478_v26 }
 0x142   : > { %v1714_v38 = vpop.eup %1713  ;;  %1239 = vst [vmem:[%s1921_s14 + $0xb8] sm:$0xff] %v1207_v55  ;;  %v1205_v39 = vadd.f32 %v1911_v57, %v1166_v33  ;;  %v1171_v40 = vmul.f32 %v1712_v24, %v1892_v34  ;;  %1733 = vpow2.f32 %v1465_v29 }
 0x143   : > { %v1716_v41 = vpop.eup %1715  ;;  %1221 = vst [vmem:[%s1921_s14 + $0x28] sm:$0xff] %v1189_v61  ;;  %v1194_v42 = vadd.f32 %v1911_v57, %v1155_v36  ;;  %v1153_v43 = vmul.f32 %v1714_v38, %v1892_v34  ;;  %1735 = vpow2.f32 %v1481_v31 }
 0x144   : > { %v1718_v45 = vpop.eup %1717  ;;  %1237 = vst [vmem:[%s1921_s14 + $0xa8] sm:$0xff] %v1205_v39  ;;  %v1210_v46 = vadd.f32 %v1911_v57, %v1171_v40  ;;  %v1169_v47 = vmul.f32 %v1716_v41, %v1892_v34  ;;  %1737 = vpow2.f32 %v1463_v35 }
 0x145   : > { %v1720_v48 = vpop.eup %1719  ;;  %1226 = vst [vmem:[%s1921_s14 + $0x50] sm:$0xff] %v1194_v42  ;;  %v1192_v51 = vadd.f32 %v1911_v57, %v1153_v43  ;;  %v1156_v52 = vmul.f32 %v1718_v45, %v1892_v34  ;;  %1739 = vpow2.f32 %v1479_v37 }
 0x146   : > { %v1722_v53 = vpop.eup %1721  ;;  %1242 = vst [vmem:[%s1921_s14 + $0xd0] sm:$0xff] %v1210_v46  ;;  %v1208_v56 = vadd.f32 %v1911_v57, %v1169_v47  ;;  %v1172_v58 = vmul.f32 %v1720_v48, %v1892_v34 }
 0x147   : > { %v1724_v59 = vpop.eup %1723  ;;  %1224 = vst [vmem:[%s1921_s14 + $0x40] sm:$0xff] %v1192_v51  ;;  %v1195_v60 = vadd.f32 %v1911_v57, %v1156_v52  ;;  %v1154_v62 = vmul.f32 %v1722_v53, %v1892_v34 }
 0x148   : > { %v1726_v63 = vpop.eup %1725  ;;  %1240 = vst [vmem:[%s1921_s14 + $0xc0] sm:$0xff] %v1208_v56  ;;  %v1211_v0 = vadd.f32 %v1911_v57, %v1172_v58  ;;  %v1170_v1 = vmul.f32 %v1724_v59, %v1892_v34 }
 0x149   : > { %v1728_v2 = vpop.eup %1727  ;;  %1227 = vst [vmem:[%s1921_s14 + $0x58] sm:$0xff] %v1195_v60  ;;  %v1193_v3 = vadd.f32 %v1911_v57, %v1154_v62  ;;  %v1159_v4 = vmul.f32 %v1726_v63, %v1892_v34 }
 0x14a   : > { %v1730_v5 = vpop.eup %1729  ;;  %1243 = vst [vmem:[%s1921_s14 + $0xd8] sm:$0xff] %v1211_v0  ;;  %v1209_v6 = vadd.f32 %v1911_v57, %v1170_v1  ;;  %v1175_v7 = vmul.f32 %v1728_v2, %v1892_v34 }
 0x14b   : > { %v1732_v8 = vpop.eup %1731  ;;  %1225 = vst [vmem:[%s1921_s14 + $0x48] sm:$0xff] %v1193_v3  ;;  %v1198_v9 = vadd.f32 %v1911_v57, %v1159_v4  ;;  %v1054_v10 = vadd.f32 1.0, %v1730_v5 }
 0x14c   : > { %v1734_v11 = vpop.eup %1733  ;;  %1241 = vst [vmem:[%s1921_s14 + $0xc8] sm:$0xff] %v1209_v6  ;;  %v1214_v12 = vadd.f32 %v1911_v57, %v1175_v7  ;;  %v1070_v13 = vadd.f32 1.0, %v1732_v8 }
 0x14d   : > { %v1736_v14 = vpop.eup %1735  ;;  %1230 = vst [vmem:[%s1921_s14 + $0x70] sm:$0xff] %v1198_v9  ;;  %1741 = vrcp.f32 %v1054_v10  ;;  %v1057_v15 = vadd.f32 1.0, %v1734_v11 }
 0x14e   : > { %v1738_v16 = vpop.eup %1737  ;;  %1246 = vst [vmem:[%s1921_s14 + $0xf0] sm:$0xff] %v1214_v12  ;;  %1743 = vrcp.f32 %v1070_v13  ;;  %v1073_v17 = vadd.f32 1.0, %v1736_v14 }
 0x14f   : > { %v1740_v18 = vpop.eup %1739  ;;  %1745 = vrcp.f32 %v1057_v15  ;;  %v1055_v19 = vadd.f32 1.0, %v1738_v16 }
 0x150   : > { %1747 = vrcp.f32 %v1073_v17  ;;  %v1071_v20 = vadd.f32 1.0, %v1740_v18 }
 0x151   : > { %1749 = vrcp.f32 %v1055_v19 }
 0x152   : > { %1751 = vrcp.f32 %v1071_v20 }
 0x157   : > { %v1742_v21 = vpop.eup %1741 }
 0x158   : > { %v1744_v44 = vpop.eup %1743  ;;  %v1157_v22 = vmul.f32 %v1742_v21, %v1892_v34 }
 0x159   : > { %v1746_v23 = vpop.eup %1745  ;;  %v1173_v49 = vmul.f32 %v1744_v44, %v1892_v34 }
 0x15a   : > { %v1748_v25 = vpop.eup %1747  ;;  %v1196_v26 = vadd.f32 %v1911_v57, %v1157_v22  ;;  %v1160_v50 = vmul.f32 %v1746_v23, %v1892_v34 }
 0x15b   : > { %v1750_v27 = vpop.eup %1749  ;;  %v1212_v28 = vadd.f32 %v1911_v57, %v1173_v49  ;;  %v1176_v29 = vmul.f32 %v1748_v25, %v1892_v34 }
 0x15c   : > { %v1752_v54 = vpop.eup %1751  ;;  %1228 = vst [vmem:[%s1921_s14 + $0x60] sm:$0xff] %v1196_v26  ;;  %v1199_v30 = vadd.f32 %v1911_v57, %v1160_v50  ;;  %v1158_v31 = vmul.f32 %v1750_v27, %v1892_v34 }
 0x15d   : > { %1244 = vst [vmem:[%s1921_s14 + $0xe0] sm:$0xff] %v1212_v28  ;;  %v1215_v32 = vadd.f32 %v1911_v57, %v1176_v29  ;;  %v1174_v55 = vmul.f32 %v1752_v54, %v1892_v34 }
 0x15e   : > { %1231 = vst [vmem:[%s1921_s14 + $0x78] sm:$0xff] %v1199_v30  ;;  %v1197_v33 = vadd.f32 %v1911_v57, %v1158_v31 }
 0x15f   : > { %1247 = vst [vmem:[%s1921_s14 + $0xf8] sm:$0xff] %v1215_v32  ;;  %v1213_v35 = vadd.f32 %v1911_v57, %v1174_v55 }
 0x160   : > { %1229 = vst [vmem:[%s1921_s14 + $0x68] sm:$0xff] %v1197_v33 }
 0x161   : > { %1245 = vst [vmem:[%s1921_s14 + $0xe8] sm:$0xff] %v1213_v35 }
 0x162 PF: > { %s15_s20 = sadd.s32 1, %s1775_s20   ;;  %s2051_s18 = smov %s1771_s19 }
 0x163   : > { %p12_p5 = scmp.ge.s32.totalorder %s15_s20, 6   ;;  %s2052_s19 = smov %s2054_s21 }
 0x165   :  { %14 = sbr.rel (!%p12_p5) target bundleno = 2 (0x2), region = 90 }

</bundles_post_ra>
